<compile_context>
chip_gen: v7x
topology: tpu7x:2x2x1
jax: 0.10.0
libtpu: 0.0.40
codegen_flags: <defaults>
</compile_context>

<pallas_src>
import jax
import jax.numpy as jnp
from jax.experimental import pallas as pl
from jax.experimental.pallas import tpu as pltpu


def _gap_kernel(x_ref, o_ref):
    # x_ref: (TR, HW) input block in VMEM; o_ref: (1, 1, TR) lane-dense means.
    # HW is never tiled, so x_ref.shape[1] == full H*W and the divide is exact.
    x = x_ref[...].astype(jnp.float32)                      # f32 accumulation
    mean = jnp.sum(x, axis=1) * (1.0 / x_ref.shape[1])      # (TR,) on lanes
    o_ref[...] = mean.reshape(o_ref.shape).astype(o_ref.dtype)


def _round_up(x, m):
    return ((x + m - 1) // m) * m


_SUBLANE = {4: 8, 2: 16, 1: 32}


def _choose_row_tile(rows, hw, itemsize):
    """Row tile: sublane-aligned, ~6 MiB streaming block (double-buffered by
    the BlockSpec pipeline), capped so the grid has >= 2 blocks whenever the
    row count allows (lets v7x's two TensorCores split the grid and keeps
    DMA/compute overlap alive even for medium-sized inputs)."""
    sublane = _SUBLANE.get(itemsize, 8)
    target_bytes = 6 << 20  # ~6 MiB per input block (review: raise from 2 MiB)
    tr = max(sublane, (target_bytes // max(1, hw * itemsize)) // sublane * sublane)
    tr = min(tr, _round_up(rows, sublane))                            # <= rows
    tr = min(tr, max(sublane, _round_up(pl.cdiv(rows, 2), sublane)))  # >= 2 blocks
    return tr


def spatial_mean(x, *, row_tile=None, fallback_bytes=0):
    """x: (N, C, H, W) -> (N, C, 1, 1), mean over spatial dims (keepdim=True).

    fallback_bytes: if the whole input is smaller than this many bytes, defer
    to jnp.mean — for tiny tensors the standalone kernel is launch-overhead
    bound; the real optimization is fusing this reduce into the producer.
    """
    n, c, h, w = x.shape
    rows = n * c
    hw = h * w
    itemsize = x.dtype.itemsize

    if rows * hw * itemsize < fallback_bytes:
        # TODO(synk): ideally fuse this mean into the producing kernel's epilogue.
        return jnp.mean(x, axis=(2, 3), keepdims=True)

    # NOTE(perf): if this reshape compiles to a separate HBM relayout of the
    # NCHW-tiled array (audit in xprof), fuse the mean into the producer or
    # feed the kernel the producer's natural 2-D layout instead.
    x2d = x.reshape(rows, hw)

    sublane = _SUBLANE.get(itemsize, 8)
    if row_tile is not None:
        # Round/validate user tiles so the (8, 128) BlockSpec rule always holds.
        tr = min(_round_up(max(1, int(row_tile)), sublane), _round_up(rows, sublane))
    else:
        tr = _choose_row_tile(rows, hw, itemsize)
    num_blocks = pl.cdiv(rows, tr)

    # Explicit VMEM budget: double-buffered (padded) input block + tiny output
    # block + headroom; stays well under every generation's VMEM (incl. v7x).
    hw_pad = _round_up(hw, 128)
    in_block_vmem = tr * hw_pad * itemsize
    out_block_vmem = _round_up(tr, 128) * itemsize
    vmem_limit = int(min(48 << 20,
                         max(24 << 20,
                             2 * (in_block_vmem + out_block_vmem) + (2 << 20))))

    cost = pl.CostEstimate(
        flops=rows * hw,
        transcendentals=0,
        bytes_accessed=rows * hw * itemsize + rows * itemsize,
    )

    out = pl.pallas_call(
        _gap_kernel,
        # Lane-dense output: one (1, 1, TR) row of means per block (unmasked
        # stores); flattened back to `rows` below.
        out_shape=jax.ShapeDtypeStruct((num_blocks, 1, tr), x.dtype),
        grid_spec=pltpu.PrefetchScalarGridSpec(
            num_scalar_prefetch=0,
            grid=(num_blocks,),
            in_specs=[pl.BlockSpec((tr, hw), lambda i: (i, 0))],
            out_specs=pl.BlockSpec((1, 1, tr), lambda i: (i, 0, 0)),
        ),
        compiler_params=pltpu.CompilerParams(
            # Row blocks are independent: lets v7x's 2 TensorCores share the
            # grid; no-op on single-core v5e/v6e.
            dimension_semantics=("parallel",),
            vmem_limit_bytes=vmem_limit,
        ),
        cost_estimate=cost,
    )(x2d)

    # (num_blocks, 1, tr) -> flat (num_blocks*tr,); entries beyond `rows` from
    # a partial last block are garbage and are sliced away here.
    return out.reshape(num_blocks * tr)[:rows].reshape(n, c, 1, 1)


if __name__ == "__main__":
    key = jax.random.PRNGKey(0)

    # Shape from the module's forward: (1, 864, 14, 14).
    x = jax.random.normal(key, (1, 864, 14, 14), dtype=jnp.float32)
    ref = jnp.mean(x, axis=(2, 3), keepdims=True)

    # 1) Default auto-tiled Pallas path (2 row blocks of 432 rows for this shape).
    y = jax.block_until_ready(spatial_mean(x))
    assert y.shape == (1, 864, 1, 1)
    assert jnp.allclose(y, ref, atol=1e-5, rtol=1e-5)

    # 2) Multi-block pipelined path with a deliberately small, sublane-unaligned
    #    user row tile (rounded to 104 inside the wrapper; 9 blocks, last partial)
    #    to exercise tiling + lane-dense output edge handling.
    y2 = jax.block_until_ready(spatial_mean(x, row_tile=100))
    assert jnp.allclose(y2, ref, atol=1e-5, rtol=1e-5)

    # 3) Small-input fallback path (defers to jnp.mean for tiny tensors).
    y3 = jax.block_until_ready(spatial_mean(x, fallback_bytes=4 << 20))
    assert jnp.allclose(y3, ref, atol=1e-6, rtol=1e-6)

    print("KERNEL_OK")
</pallas_src>

<mosaic_0001>
module attributes {stable_mosaic.version = 11 : i64} {
  func.func @_gap_kernel(%arg0: i32, %arg1: memref<432x196xf32, #tpu.memory_space<vmem>>, %arg2: memref<1x1x432xf32, #tpu.memory_space<vmem>>) attributes {dimension_semantics = [#tpu.dimension_semantics<parallel>], iteration_bounds = array<i64: 2>, scalar_prefetch = 0 : i64, scratch_operands = 0 : i64, tpu.core_type = #tpu.core_type<tc>, window_params = [{transform_indices = @transform_0, window_bounds = array<i64: 432, 196>}, {transform_indices = @transform_1, window_bounds = array<i64: 1, 1, 432>}]} {
    %c0 = arith.constant 0 : index
    %c0_0 = arith.constant 0 : index
    %0 = vector.load %arg1[%c0, %c0_0] : memref<432x196xf32, #tpu.memory_space<vmem>>, vector<432x196xf32>
    %cst = arith.constant dense<0.000000e+00> : vector<432xf32>
    %1 = vector.multi_reduction <add>, %0, %cst [1] : vector<432x196xf32> to vector<432xf32>
    %cst_1 = arith.constant 0.00510204071 : f32
    %2 = vector.broadcast %cst_1 : f32 to vector<432xf32>
    %3 = arith.mulf %1, %2 : vector<432xf32>
    %4 = vector.shape_cast %3 : vector<432xf32> to vector<1x1x432xf32>
    %c0_2 = arith.constant 0 : index
    %c0_3 = arith.constant 0 : index
    %c0_4 = arith.constant 0 : index
    %5 = vector.load %arg2[%c0_2, %c0_3, %c0_4] : memref<1x1x432xf32, #tpu.memory_space<vmem>>, vector<1x1x432xf32>
    tpu.vector_store %arg2[%c0_2, %c0_3, %c0_4], %4 {strides = array<i32>} : memref<1x1x432xf32, #tpu.memory_space<vmem>>, vector<1x1x432xf32>,
    return
  }
  func.func @transform_0(%arg0: i32) -> (i32, i32) {
    %c0_i32 = arith.constant 0 : i32
    %c0_i32_0 = arith.constant 0 : i32
    return %arg0, %c0_i32 : i32, i32
  }
  func.func @transform_1(%arg0: i32) -> (i32, i32, i32) {
    %c0_i32 = arith.constant 0 : i32
    %c0_i32_0 = arith.constant 0 : i32
    %c0_i32_1 = arith.constant 0 : i32
    return %arg0, %c0_i32, %c0_i32_0 : i32, i32, i32
  }
}

</mosaic_0001>

<bundles_post_ra>
// kernel: tpu_custom_call.1
= control target key start
LH: loop header
LB: loop body
LE: loop exit
PB: predicated region body
PF: predicated region fallthrough
CT: control target
= control target key end

     0   :  { %6 = vsyncpa [#allocation3], 0  ;;  %s7548_s0 = inlined_call_operand.vmem [shape: f32[864,196], index: 0, kind: input, shape index: {}]   ;;  %s7549_s1 = inlined_call_operand.hbm [shape: f32[2,1,432], index: 1, kind: output, shape index: {}]  }
   0x1   :  { %8 = vsyncpa [#allocation3 + $0x1], 0  ;;  %s5625_s6 = smov 0   ;;  %s5627_s7 = smov 0  }
   0x2   :  { %s5629_s8 = smov 0   ;;  %s5631_s9 = smov 0  }
   0x3 LB: > { %s5646_s10 = sadd.s32 4294967295, %s5610_s9   ;;  %s5491_s11 = sadd.s32 4294967294, %s5610_s9   ;;  %s5610_s9 = sphi %s5631_s9, %s7563_s9   ;;  %s5606_s8 = sphi %s5629_s8, %s7562_s8   ;;  %s5602_s7 = sphi %s5627_s7, %s7561_s7   ;;  %s5598_s6 = sphi %s5625_s6, %s7560_s6  }
   0x4   : > { %s5650_s12 = sadd.s32 1, %s5610_s9   ;;  %s47_s13 = sadd.s32 1, %s5606_s8 }
   0x5   : > { %s44_s14 = ssub.s32 %s5610_s9, %s5650_s12  ;;  %p57_p0 = scmp.ne.s32.totalorder %s5606_s8, %s5602_s7 }
   0x6   : > { %p45_p1 = scmp.eq.s32.totalorder %s44_s14, 0  ;;  %p58_p2 = scmp.eq.s32.totalorder %s5646_s10, 1 }
   0x7   : > { %p63_p3 = scmp.ne.s32.totalorder %s5602_s7, %s5598_s6  ;;  %p64_p4 = scmp.eq.s32.totalorder %s5491_s11, 1 }
   0x8   : > { %s5661_s15 = scalar_select %p45_p1, %s5606_s8, %s47_s13  }
   0x9   : > { %p5663_p5 = por %p58_p2, %p57_p0  ;;  %p5667_p6 = por %p64_p4, %p63_p3 }
   0xa   : > { %p5494_p7 = scmp.ge.s32.totalorder %s5610_s9, 1  ;;  %p92_p8 = scmp.lt.s32.totalorder %s5610_s9, 3 }
   0xc   : > { %p93_p9 = pnand %p5494_p7, %p92_p8 }
   0xe   : > { %96 = sbr.rel (%p93_p9) target bundleno = 633 (0x279), region = 24 }
  0x15   : > { %s113_s18 = smul.u32 54, %s5646_s10  ;;  %vm228_vm0 = vcmask 556032   ;;  %vm5100_vm1 = vcmask 130112   ;;  %vm5107_vm2 = vcmask 195712   ;;  %vm5114_vm3 = vcmask 261312   ;;  %s110_s23 = sand.u32 1, %s5602_s7  }
  0x16   : > { %vm5121_vm4 = vcmask 326912   ;;  %vm5128_vm5 = vcmask 392512   ;;  %vm5135_vm6 = vcmask 458112   ;;  %vm5142_vm7 = vcmask 523712   ;;  %s5495_s24 = sshll.u32 %s110_s23, 2  ;;  %s5504_s25 = sshll.u32 %s5646_s10, 6 }
  0x17   : > { %p114_p10 = scmp.lt.s32.totalorder %s113_s18, 107  ;;  %vm5149_vm8 = vcmask 589312   ;;  %vm5156_vm9 = vcmask 654912   ;;  %vm5163_vm10 = vcmask 720512   ;;  %vm5170_vm11 = vcmask 786112   ;;  %s112_s26 = scalar_lea.vmem [#allocation2], %s5495_s24 }
  0x18   : > { %vm5177_vm12 = vcmask 851712   ;;  %vm5184_vm13 = vcmask 917312   ;;  %vm5191_vm14 = vcmask 982912   ;;  %vm5198_vm15 = vcmask 1048512   ;;  %s5432_s27 = sshll.u32 %s112_s26, 4  ;;  %s7506_s30 = scalar_lea.hbm %s7549_s1, %s5504_s25  ;;  %s7508_s27 = int_to_ptr.vmem [resolvable:$true] %s5432_s27 }
  0x19   : > { %s7565_s18 = smov (!%p114_p10, %s113_s18), 107  ;;  %s5418_s2 = scalar_lea.sflag [#allocation3], %s110_s23 }
  0x1a   : > { %s5503_s19 = sshll.u32 %s7565_s18, 4  ;;  %s5548_s3 = scalar_lea.vmem %s7508_s27, 64 }
  0x1b   : > { %s5677_s22 = scalar_lea.vmem %s7548_s0, %s5503_s19  ;;  %p5549_p11 = scmp.ne.s32.totalorder %s7508_s27, %s5548_s3 }
  0x1c   : > { %v124_v0 = vld [vmem:[%s5677_s22 + $0x20] sm:$0xff]  ;;  %v125_v1 = vld [vmem:[%s5677_s22 + $0x28] sm:$0xff]  ;;  %v126_v5 = vld [vmem:[%s5677_s22 + $0x30] sm:$0xff]  ;;  %s5614_s4 = smov [#allocation2]  }
  0x1d   : > { %v120_v2 = vld [vmem:[%s5677_s22] sm:$0xff]  ;;  %v237_v3 = vsel %vm228_vm0, %v125_v1, 0.0  ;;  %v121_v4 = vld [vmem:[%s5677_s22 + $0x8] sm:$0xff]  ;;  %v127_v6 = vld [vmem:[%s5677_s22 + $0x38] sm:$0xff]  ;;  %p5550_p12 = pnand %p5549_p11, %p5663_p5  ;;  %s5552_s5 = sshll.u32 %s5614_s4, 4  ;;  %s5553_s5 = int_to_ptr.vmem [resolvable:$false] %s5552_s5 }
  0x1e   : > { %v238_v7 = vadd.f32 %v237_v3, %v124_v0  ;;  %v229_v8 = vsel %vm228_vm0, %v121_v4, 0.0  ;;  %v241_v9 = vsel %vm228_vm0, %v127_v6, 0.0  ;;  %v122_v10 = vld [vmem:[%s5677_s22 + $0x10] sm:$0xff]  ;;  %v123_v11 = vld [vmem:[%s5677_s22 + $0x18] sm:$0xff]  ;;  %v129_v15 = vld [vmem:[%s5677_s22 + $0x48] sm:$0xff]  ;;  %s5554_s10 = scalar_lea.vmem %s5553_s5, 128  ;;  %p5555_p0 = scmp.lt.s32.totalorder %s7508_s27, %s5553_s5 }
  0x1f   : > { %v230_v12 = vadd.f32 %v229_v8, %v120_v2  ;;  %v233_v13 = vsel %vm228_vm0, %v123_v11, 0.0  ;;  %v131_v14 = vld [vmem:[%s5677_s22 + $0x58] sm:$0xff]  ;;  %v242_v16 = vadd.f32 %v241_v9, %v126_v5  ;;  %v130_v18 = vld [vmem:[%s5677_s22 + $0x50] sm:$0xff]  ;;  %v128_v20 = vld [vmem:[%s5677_s22 + $0x40] sm:$0xff]  ;;  %v245_v21 = vsel %vm228_vm0, %v129_v15, 0.0  ;;  %p5551_p13 = pneg %p5550_p12  ;;  %p5556_p1 = scmp.lt.s32.totalorder %s5554_s10, %s5548_s3 }
  0x20   : > { %239 = vadd.xlane.f32.xlu1 %v238_v7  ;;  %v234_v17 = vadd.f32 %v233_v13, %v122_v10  ;;  %v249_v19 = vsel %vm228_vm0, %v131_v14, 0.0  ;;  %v135_v22 = vld [vmem:[%s5677_s22 + $0x78] sm:$0xff]  ;;  %v133_v23 = vld [vmem:[%s5677_s22 + $0x68] sm:$0xff]  ;;  %v246_v25 = vadd.f32 %v245_v21, %v128_v20  ;;  %v134_v26 = vld [vmem:[%s5677_s22 + $0x70] sm:$0xff] }
  0x21   : > { %231 = vadd.xlane.f32.xlu0 %v230_v12  ;;  %v250_v24 = vadd.f32 %v249_v19, %v130_v18  ;;  %v257_v27 = vsel %vm228_vm0, %v135_v22, 0.0  ;;  %v132_v28 = vld [vmem:[%s5677_s22 + $0x60] sm:$0xff]  ;;  %v253_v29 = vsel %vm228_vm0, %v133_v23, 0.0  ;;  %v139_v30 = vld [vmem:[%s5677_s22 + $0x98] sm:$0xff]  ;;  %v137_v31 = vld [vmem:[%s5677_s22 + $0x88] sm:$0xff]  ;;  %p5557_p2 = por %p5556_p1, %p5555_p0 }
  0x22   : > { %v258_v32 = vadd.f32 %v257_v27, %v134_v26  ;;  %v254_v33 = vadd.f32 %v253_v29, %v132_v28  ;;  %v138_v34 = vld [vmem:[%s5677_s22 + $0x90] sm:$0xff]  ;;  %v265_v35 = vsel %vm228_vm0, %v139_v30, 0.0  ;;  %v136_v36 = vld [vmem:[%s5677_s22 + $0x80] sm:$0xff]  ;;  %v261_v37 = vsel %vm228_vm0, %v137_v31, 0.0  ;;  %v143_v38 = vld [vmem:[%s5677_s22 + $0xb8] sm:$0xff] }
  0x23   : > { %v141_v39 = vld [vmem:[%s5677_s22 + $0xa8] sm:$0xff]  ;;  %v266_v40 = vadd.f32 %v265_v35, %v138_v34  ;;  %v262_v41 = vadd.f32 %v261_v37, %v136_v36  ;;  %v142_v42 = vld [vmem:[%s5677_s22 + $0xb0] sm:$0xff]  ;;  %v273_v43 = vsel %vm228_vm0, %v143_v38, 0.0  ;;  %v147_v44 = vld [vmem:[%s5677_s22 + $0xd8] sm:$0xff]  ;;  %p5558_p3 = pnand %p5557_p2, %p5551_p13 }
  0x24   : > { %243 = vadd.xlane.f32.xlu1 %v242_v16  ;;  %v140_v45 = vld [vmem:[%s5677_s22 + $0xa0] sm:$0xff]  ;;  %v269_v46 = vsel %vm228_vm0, %v141_v39, 0.0  ;;  %v145_v47 = vld [vmem:[%s5677_s22 + $0xc8] sm:$0xff]  ;;  %v274_v48 = vadd.f32 %v273_v43, %v142_v42  ;;  %v146_v49 = vld [vmem:[%s5677_s22 + $0xd0] sm:$0xff]  ;;  %v281_v50 = vsel %vm228_vm0, %v147_v44, 0.0 }
  0x25   : > { %235 = vadd.xlane.f32.xlu0 %v234_v17  ;;  %v144_v51 = vld [vmem:[%s5677_s22 + $0xc0] sm:$0xff]  ;;  %v151_v52 = vld [vmem:[%s5677_s22 + $0xf8] sm:$0xff]  ;;  %v270_v53 = vadd.f32 %v269_v46, %v140_v45  ;;  %v277_v54 = vsel %vm228_vm0, %v145_v47, 0.0  ;;  %v150_v55 = vld [vmem:[%s5677_s22 + $0xf0] sm:$0xff]  ;;  %v282_v0 = vadd.f32 %v281_v50, %v146_v49 }
  0x26   : > { %v149_v56 = vld [vmem:[%s5677_s22 + $0xe8] sm:$0xff]  ;;  %v186_v57 = vld [vmem:[%s5677_s22 + $0x210] sm:$0xff]  ;;  %v187_v58 = vld [vmem:[%s5677_s22 + $0x218] sm:$0xff]  ;;  %v289_v1 = vsel %vm228_vm0, %v151_v52, 0.0  ;;  %v278_v8 = vadd.f32 %v277_v54, %v144_v51 }
  0x27   : > { %v155_v59 = vld [vmem:[%s5677_s22 + $0x118] sm:$0xff]  ;;  %v361_v60 = vsel %vm228_vm0, %v187_v58, 0.0  ;;  %v184_v61 = vld [vmem:[%s5677_s22 + $0x200] sm:$0xff]  ;;  %v185_v62 = vld [vmem:[%s5677_s22 + $0x208] sm:$0xff]  ;;  %v285_v16 = vsel %vm228_vm0, %v149_v56, 0.0 }
  0x28   : > { %251 = vadd.xlane.f32.xlu1 %v250_v24  ;;  %v190_v63 = vld [vmem:[%s5677_s22 + $0x230] sm:$0xff]  ;;  %v148_v2 = vld [vmem:[%s5677_s22 + $0xe0] sm:$0xff]  ;;  %v5733_v3 = vadd.f32 %v361_v60, %v186_v57  ;;  %v357_v4 = vsel %vm228_vm0, %v185_v62, 0.0  ;;  %v191_v5 = vld [vmem:[%s5677_s22 + $0x238] sm:$0xff]  ;;  %v290_v24 = vadd.f32 %v289_v1, %v150_v55  ;;  %v297_v31 = vsel %vm228_vm0, %v155_v59, 0.0 }
  0x29   : > { %247 = vadd.xlane.f32.xlu0 %v246_v25  ;;  %v188_v6 = vld [vmem:[%s5677_s22 + $0x220] sm:$0xff]  ;;  %v189_v7 = vld [vmem:[%s5677_s22 + $0x228] sm:$0xff]  ;;  %v5740_v10 = vadd.f32 %v357_v4, %v184_v61  ;;  %v369_v11 = vsel %vm228_vm0, %v191_v5, 0.0  ;;  %v194_v13 = vld [vmem:[%s5677_s22 + $0x250] sm:$0xff]  ;;  %v286_v39 = vadd.f32 %v285_v16, %v148_v2  ;;  %v5612_v16 = vmov 0  }
  0x2a   : > { %v153_v9 = vld [vmem:[%s5677_s22 + $0x108] sm:$0xff]  ;;  %v365_v12 = vsel %vm228_vm0, %v189_v7, 0.0  ;;  %v195_v14 = vld [vmem:[%s5677_s22 + $0x258] sm:$0xff]  ;;  %v192_v15 = vld [vmem:[%s5677_s22 + $0x240] sm:$0xff]  ;;  %v5749_v18 = vadd.f32 %v369_v11, %v190_v63  ;;  %5546 = vset.pattern.permute.xlu0 %v5612_v16  ;;  %5547 = vset.pattern.permute.xlu1 %v5612_v16 }
  0x2b   : > { %v154_v17 = vld [vmem:[%s5677_s22 + $0x110] sm:$0xff]  ;;  %v5751_v19 = vadd.f32 %v365_v12, %v188_v6  ;;  %v377_v20 = vsel %vm228_vm0, %v195_v14, 0.0  ;;  %v193_v21 = vld [vmem:[%s5677_s22 + $0x248] sm:$0xff]  ;;  %v199_v23 = vld [vmem:[%s5677_s22 + $0x278] sm:$0xff]  ;;  %v293_v47 = vsel %vm228_vm0, %v153_v9, 0.0 }
  0x2c   : > { %259 = vadd.xlane.f32.xlu1 %v258_v32  ;;  %v198_v22 = vld [vmem:[%s5677_s22 + $0x270] sm:$0xff]  ;;  %v5757_v25 = vadd.f32 %v377_v20, %v194_v13  ;;  %v373_v26 = vsel %vm228_vm0, %v193_v21, 0.0  ;;  %v385_v27 = vsel %vm228_vm0, %v199_v23, 0.0  ;;  %v196_v28 = vld [vmem:[%s5677_s22 + $0x260] sm:$0xff]  ;;  %v197_v29 = vld [vmem:[%s5677_s22 + $0x268] sm:$0xff]  ;;  %v298_v55 = vadd.f32 %v297_v31, %v154_v17 }
  0x2d   : > { %255 = vadd.xlane.f32.xlu0 %v254_v33  ;;  %v202_v30 = vld [vmem:[%s5677_s22 + $0x290] sm:$0xff]  ;;  %v152_v32 = vld [vmem:[%s5677_s22 + $0x100] sm:$0xff]  ;;  %v5766_v33 = vadd.f32 %v373_v26, %v192_v15  ;;  %v5768_v34 = vadd.f32 %v385_v27, %v198_v22  ;;  %v381_v35 = vsel %vm228_vm0, %v197_v29, 0.0  ;;  %v203_v36 = vld [vmem:[%s5677_s22 + $0x298] sm:$0xff] }
  0x2e   : > { %v200_v37 = vld [vmem:[%s5677_s22 + $0x280] sm:$0xff]  ;;  %v201_v38 = vld [vmem:[%s5677_s22 + $0x288] sm:$0xff]  ;;  %v393_v42 = vsel %vm228_vm0, %v203_v36, 0.0  ;;  %v206_v44 = vld [vmem:[%s5677_s22 + $0x2b0] sm:$0xff]  ;;  %v294_v6 = vadd.f32 %v293_v47, %v152_v32 }
  0x2f   : > { %v389_v43 = vsel %vm228_vm0, %v201_v38, 0.0  ;;  %v207_v45 = vld [vmem:[%s5677_s22 + $0x2b8] sm:$0xff]  ;;  %v204_v46 = vld [vmem:[%s5677_s22 + $0x2a0] sm:$0xff]  ;;  %v5784_v49 = vadd.f32 %v393_v42, %v202_v30  ;;  %v205_v52 = vld [vmem:[%s5677_s22 + $0x2a8] sm:$0xff] }
  0x30   : > { %267 = vadd.xlane.f32.xlu1 %v266_v40  ;;  %v159_v40 = vld [vmem:[%s5677_s22 + $0x138] sm:$0xff]  ;;  %v5786_v50 = vadd.f32 %v389_v43, %v200_v37  ;;  %v401_v51 = vsel %vm228_vm0, %v207_v45, 0.0  ;;  %v397_v57 = vsel %vm228_vm0, %v205_v52, 0.0  ;;  %v208_v59 = vld [vmem:[%s5677_s22 + $0x2c0] sm:$0xff]  ;;  %v209_v60 = vld [vmem:[%s5677_s22 + $0x2c8] sm:$0xff] }
  0x31   : > { %263 = vadd.xlane.f32.xlu0 %v262_v41  ;;  %v5775_v41 = vadd.f32 %v381_v35, %v196_v28  ;;  %v211_v54 = vld [vmem:[%s5677_s22 + $0x2d8] sm:$0xff]  ;;  %v5792_v56 = vadd.f32 %v401_v51, %v206_v44  ;;  %v214_v61 = vld [vmem:[%s5677_s22 + $0x2f0] sm:$0xff]  ;;  %v5800_v63 = vadd.f32 %v397_v57, %v204_v46  ;;  %v405_v1 = vsel %vm228_vm0, %v209_v60, 0.0  ;;  %v212_v4 = vld [vmem:[%s5677_s22 + $0x2e0] sm:$0xff] }
  0x32   : > { %v409_v58 = vsel %vm228_vm0, %v211_v54, 0.0  ;;  %v158_v62 = vld [vmem:[%s5677_s22 + $0x130] sm:$0xff]  ;;  %v215_v2 = vld [vmem:[%s5677_s22 + $0x2f8] sm:$0xff]  ;;  %v213_v5 = vld [vmem:[%s5677_s22 + $0x2e8] sm:$0xff]  ;;  %v5810_v9 = vadd.f32 %v405_v1, %v208_v59  ;;  %v305_v17 = vsel %vm228_vm0, %v159_v40, 0.0 }
  0x33   : > { %v156_v7 = vld [vmem:[%s5677_s22 + $0x120] sm:$0xff]  ;;  %v417_v11 = vsel %vm228_vm0, %v215_v2, 0.0  ;;  %v413_v12 = vsel %vm228_vm0, %v213_v5, 0.0  ;;  %v218_v13 = vld [vmem:[%s5677_s22 + $0x310] sm:$0xff]  ;;  %v219_v14 = vld [vmem:[%s5677_s22 + $0x318] sm:$0xff]  ;;  %v306_v44 = vadd.f32 %v305_v17, %v158_v62 }
  0x34   : > { %275 = vadd.xlane.f32.xlu1 %v274_v48  ;;  %v157_v48 = vld [vmem:[%s5677_s22 + $0x128] sm:$0xff]  ;;  %v216_v15 = vld [vmem:[%s5677_s22 + $0x300] sm:$0xff]  ;;  %v5819_v21 = vadd.f32 %v417_v11, %v214_v61  ;;  %v5821_v22 = vadd.f32 %v413_v12, %v212_v4  ;;  %v425_v23 = vsel %vm228_vm0, %v219_v14, 0.0  ;;  %v222_v32 = vld [vmem:[%s5677_s22 + $0x330] sm:$0xff] }
  0x35   : > { %271 = vadd.xlane.f32.xlu0 %v270_v53  ;;  %v210_v53 = vld [vmem:[%s5677_s22 + $0x2d0] sm:$0xff]  ;;  %v161_v20 = vld [vmem:[%s5677_s22 + $0x148] sm:$0xff]  ;;  %v220_v26 = vld [vmem:[%s5677_s22 + $0x320] sm:$0xff]  ;;  %v301_v28 = vsel %vm228_vm0, %v157_v48, 0.0  ;;  %v5828_v29 = vadd.f32 %v425_v23, %v218_v13 }
  0x36   : > { %v221_v27 = vld [vmem:[%s5677_s22 + $0x328] sm:$0xff]  ;;  %v223_v35 = vld [vmem:[%s5677_s22 + $0x338] sm:$0xff]  ;;  %v224_v36 = vld [vmem:[%s5677_s22 + $0x340] sm:$0xff]  ;;  %v302_v48 = vadd.f32 %v301_v28, %v156_v7  ;;  %v309_v57 = vsel %vm228_vm0, %v161_v20, 0.0 }
  0x37   : > { %v429_v31 = vsel %vm228_vm0, %v221_v27, 0.0  ;;  %v225_v40 = vld [vmem:[%s5677_s22 + $0x348] sm:$0xff]  ;;  %v226_v42 = vld [vmem:[%s5677_s22 + $0x350] sm:$0xff]  ;;  %v227_v43 = vld [vmem:[%s5677_s22 + $0x358] sm:$0xff] }
  0x38   : > { %283 = vadd.xlane.f32.xlu1 %v282_v0  ;;  %v5802_v0 = vadd.f32 %v409_v58, %v210_v53  ;;  %v5837_v38 = vadd.f32 %v429_v31, %v220_v26  ;;  %v437_v46 = vsel %vm228_vm0, %v225_v40, 0.0  ;;  %v441_v47 = vsel %vm228_vm0, %v227_v43, 0.0  ;;  %v162_v51 = vld [vmem:[%s5677_s22 + $0x150] sm:$0xff]  ;;  %v167_v58 = vld [vmem:[%s5677_s22 + $0x178] sm:$0xff]  ;;  %v165_v59 = vld [vmem:[%s5677_s22 + $0x168] sm:$0xff] }
  0x39   : > { %279 = vadd.xlane.f32.xlu0 %v278_v8  ;;  %v163_v8 = vld [vmem:[%s5677_s22 + $0x158] sm:$0xff]  ;;  %v5849_v53 = vadd.f32 %v437_v46, %v224_v36  ;;  %v5851_v54 = vadd.f32 %v441_v47, %v226_v42  ;;  %v166_v62 = vld [vmem:[%s5677_s22 + $0x170] sm:$0xff]  ;;  %v321_v1 = vsel %vm228_vm0, %v167_v58, 0.0  ;;  %v164_v2 = vld [vmem:[%s5677_s22 + $0x160] sm:$0xff]  ;;  %v317_v4 = vsel %vm228_vm0, %v165_v59, 0.0 }
  0x3a   : > { %v313_v52 = vsel %vm228_vm0, %v163_v8, 0.0  ;;  %v171_v5 = vld [vmem:[%s5677_s22 + $0x198] sm:$0xff]  ;;  %v322_v7 = vadd.f32 %v321_v1, %v166_v62  ;;  %v318_v8 = vadd.f32 %v317_v4, %v164_v2  ;;  %v170_v11 = vld [vmem:[%s5677_s22 + $0x190] sm:$0xff]  ;;  %v168_v13 = vld [vmem:[%s5677_s22 + $0x180] sm:$0xff] }
  0x3b   : > { %v314_v60 = vadd.f32 %v313_v52, %v162_v51  ;;  %v329_v12 = vsel %vm228_vm0, %v171_v5, 0.0  ;;  %v173_v16 = vld [vmem:[%s5677_s22 + $0x1a8] sm:$0xff]  ;;  %v174_v23 = vld [vmem:[%s5677_s22 + $0x1b0] sm:$0xff]  ;;  %v172_v26 = vld [vmem:[%s5677_s22 + $0x1a0] sm:$0xff] }
  0x3c   : > { %291 = vadd.xlane.f32.xlu1 %v290_v24  ;;  %v217_v24 = vld [vmem:[%s5677_s22 + $0x308] sm:$0xff]  ;;  %v330_v17 = vadd.f32 %v329_v12, %v170_v11  ;;  %v333_v27 = vsel %vm228_vm0, %v173_v16, 0.0  ;;  %v179_v28 = vld [vmem:[%s5677_s22 + $0x1d8] sm:$0xff]  ;;  %v182_v47 = vld [vmem:[%s5677_s22 + $0x1f0] sm:$0xff] }
  0x3d   : > { %287 = vadd.xlane.f32.xlu0 %v286_v39  ;;  %v421_v30 = vsel %vm228_vm0, %v217_v24, 0.0  ;;  %v433_v39 = vsel %vm228_vm0, %v223_v35, 0.0  ;;  %v178_v35 = vld [vmem:[%s5677_s22 + $0x1d0] sm:$0xff]  ;;  %v345_v36 = vsel %vm228_vm0, %v179_v28, 0.0  ;;  %v183_v42 = vld [vmem:[%s5677_s22 + $0x1f8] sm:$0xff]  ;;  %v181_v43 = vld [vmem:[%s5677_s22 + $0x1e8] sm:$0xff] }
  0x3e   : > { %v5835_v37 = vadd.f32 %v421_v30, %v216_v15  ;;  %v5843_v45 = vadd.f32 %v433_v39, %v222_v32  ;;  %v175_v15 = vld [vmem:[%s5677_s22 + $0x1b8] sm:$0xff]  ;;  %v177_v30 = vld [vmem:[%s5677_s22 + $0x1c8] sm:$0xff]  ;;  %v334_v32 = vadd.f32 %v333_v27, %v172_v26  ;;  %v176_v39 = vld [vmem:[%s5677_s22 + $0x1c0] sm:$0xff]  ;;  %v349_v52 = vsel %vm228_vm0, %v181_v43, 0.0 }
  0x3f   : > { %v337_v24 = vsel %vm228_vm0, %v175_v15, 0.0  ;;  %v341_v40 = vsel %vm228_vm0, %v177_v30, 0.0  ;;  %v180_v51 = vld [vmem:[%s5677_s22 + $0x1e0] sm:$0xff] }
  0x40   : > { %299 = vadd.xlane.f32.xlu1 %v298_v55  ;;  %v160_v55 = vld [vmem:[%s5677_s22 + $0x140] sm:$0xff]  ;;  %v338_v31 = vadd.f32 %v337_v24, %v174_v23  ;;  %v342_v46 = vadd.f32 %v341_v40, %v176_v39 }
  0x41   : > { %295 = vadd.xlane.f32.xlu0 %v294_v6  ;;  %v310_v61 = vadd.f32 %v309_v57, %v160_v55  ;;  %v169_v6 = vld [vmem:[%s5677_s22 + $0x188] sm:$0xff]  ;;  %v350_v57 = vadd.f32 %v349_v52, %v180_v51 }
  0x42   : > { %v325_v14 = vsel %vm228_vm0, %v169_v6, 0.0 }
  0x43   : > { %v326_v20 = vadd.f32 %v325_v14, %v168_v13 }
  0x44   : > { %307 = vadd.xlane.f32.xlu1 %v306_v44  ;;  %v346_v44 = vadd.f32 %v345_v36, %v178_v35 }
  0x45   : > { %303 = vadd.xlane.f32.xlu0 %v302_v48  ;;  %v353_v48 = vsel %vm228_vm0, %v183_v42, 0.0 }
  0x46   : > { %v354_v55 = vadd.f32 %v353_v48, %v182_v47 }
  0x48   : > { %315 = vadd.xlane.f32.xlu1 %v314_v60 }
  0x49   : > { %311 = vadd.xlane.f32.xlu0 %v310_v61 }
  0x4c   : > { %323 = vadd.xlane.f32.xlu1 %v322_v7 }
  0x4d   : > { %319 = vadd.xlane.f32.xlu0 %v318_v8 }
  0x50   : > { %331 = vadd.xlane.f32.xlu1 %v330_v17 }
  0x51   : > { %327 = vadd.xlane.f32.xlu0 %v326_v20 }
  0x54   : > { %339 = vadd.xlane.f32.xlu1 %v338_v31 }
  0x55   : > { %335 = vadd.xlane.f32.xlu0 %v334_v32 }
  0x58   : > { %347 = vadd.xlane.f32.xlu1 %v346_v44 }
  0x59   : > { %343 = vadd.xlane.f32.xlu0 %v342_v46 }
  0x5c   : > { %355 = vadd.xlane.f32.xlu1 %v354_v55 }
  0x5d   : > { %351 = vadd.xlane.f32.xlu0 %v350_v57 }
  0x60   : > { %363 = vadd.xlane.f32.xlu1 %v5733_v3  ;;  %v7550_v3 = vlaneseq }
  0x61   : > { %359 = vadd.xlane.f32.xlu0 %v5740_v10  ;;  %v5613_v10 = vmov 1966171168  }
  0x64   : > { %371 = vadd.xlane.f32.xlu1 %v5749_v18  ;;  %v2286_v18 = vunpack.c.l.s4 %v5613_v10 }
  0x65   : > { %367 = vadd.xlane.f32.xlu0 %v5751_v19  ;;  %v5908_v19 = vshrl.u32 %v7550_v3, 7 }
  0x68   : > { %379 = vadd.xlane.f32.xlu1 %v5757_v25  ;;  %v2287_v25 = vunpack.c.0.s8 %v2286_v18 }
  0x69   : > { %375 = vadd.xlane.f32.xlu0 %v5766_v33 }
  0x6c   : > { %387 = vadd.xlane.f32.xlu1 %v5768_v34  ;;  %v5911_v34 = vsub.s32 0, %v5908_v19 }
  0x6d   : > { %383 = vadd.xlane.f32.xlu0 %v5775_v41  ;;  %v5914_v41 = vsub.s32 1, %v5908_v19 }
  0x70   : > { %395 = vadd.xlane.f32.xlu1 %v5784_v49  ;;  %v5917_v49 = vsub.s32 2, %v5908_v19 }
  0x71   : > { %391 = vadd.xlane.f32.xlu0 %v5786_v50  ;;  %v5920_v50 = vsub.s32 3, %v5908_v19 }
  0x74   : > { %403 = vadd.xlane.f32.xlu1 %v5792_v56 }
  0x75   : > { %399 = vadd.xlane.f32.xlu0 %v5800_v63 }
  0x78   : > { %411 = vadd.xlane.f32.xlu1 %v5802_v0  ;;  %v5925_v0 = vsub.s32 4, %v5908_v19 }
  0x79   : > { %407 = vadd.xlane.f32.xlu0 %v5810_v9  ;;  %v5928_v9 = vsub.s32 5, %v5908_v19 }
  0x7c   : > { %419 = vadd.xlane.f32.xlu1 %v5819_v21  ;;  %v5931_v21 = vsub.s32 6, %v5908_v19 }
  0x7d   : > { %415 = vadd.xlane.f32.xlu0 %v5821_v22 }
  0x80   : > { %427 = vadd.xlane.f32.xlu1 %v5828_v29  ;;  %v5934_v29 = vsub.s32 7, %v5908_v19 }
  0x81   : > { %423 = vadd.xlane.f32.xlu0 %v5835_v37  ;;  %v5937_v37 = vsub.s32 %v2287_v25, %v5908_v19 }
  0x83   : > { %7555 = vst [vmem:[#allocation5_spill] sm:$0xff] %v5937_v37 }
  0x84   : > { %435 = vadd.xlane.f32.xlu1 %v5843_v45 }
  0x85   : > { %431 = vadd.xlane.f32.xlu0 %v5837_v38 }
  0x88   : > { %443 = vadd.xlane.f32.xlu1 %v5851_v54 }
  0x89   : > { %439 = vadd.xlane.f32.xlu0 %v5849_v53 }
  0xad   : > { %v240_v33 = vpop.xlane.xlu1 %239 }
  0xae   : > { %v5922_v56 = vmul.f32 0.0051020407, %v240_v33  ;;  %v232_v63 = vpop.xlane.xlu0 %231 }
  0xaf   : > { %v445_v22 = vmul.f32 0.0051020407, %v232_v63 }
  0xb0   : > { %v620_v38 = vrot.slane %v5922_v56, %v5911_v34  ;;  %v624_v45 = vrot.slane %v5922_v56, %v5914_v41  ;;  %v628_v53 = vrot.slane %v5922_v56, %v5917_v49  ;;  %v632_v54 = vrot.slane %v5922_v56, %v5920_v50 }
  0xb1   : > { %v244_v58 = vpop.xlane.xlu1 %243  ;;  %v556_v59 = vrot.slane %v445_v22, %v5911_v34  ;;  %v560_v60 = vrot.slane %v445_v22, %v5914_v41  ;;  %v564_v61 = vrot.slane %v445_v22, %v5917_v49  ;;  %v568_v62 = vrot.slane %v445_v22, %v5920_v50 }
  0xb2   : > { %v5951_v1 = vmul.f32 0.0051020407, %v244_v58  ;;  %v236_v2 = vpop.xlane.xlu0 %235  ;;  %v572_v4 = vrot.slane %v445_v22, %v5925_v0  ;;  %v576_v5 = vrot.slane %v445_v22, %v5928_v9  ;;  %v580_v6 = vrot.slane %v445_v22, %v5931_v21 }
  0xb3   : > { %v446_v7 = vmul.f32 0.0051020407, %v236_v2  ;;  %v584_v8 = vrot.slane %v445_v22, %v5934_v29  ;;  %v2281_v11 = vcombine.low %v556_v59, %v560_v60  ;;  %v2282_v12 = vcombine.low %v564_v61, %v568_v62 }
  0xb4   : > { %v2283_v13 = vcombine.low %v572_v4, %v576_v5  ;;  %v636_v14 = vrot.slane %v5922_v56, %v5925_v0  ;;  %v640_v15 = vrot.slane %v5922_v56, %v5928_v9  ;;  %v644_v16 = vrot.slane %v5922_v56, %v5931_v21 }
  0xb5   : > { %v252_v17 = vpop.xlane.xlu1 %251  ;;  %v2284_v20 = vcombine.low %v580_v6, %v584_v8  ;;  %v2291_v23 = vrot.slane %v2281_v11, %v5937_v37  ;;  %v2298_v24 = vrot.slane %v2282_v12, %v5937_v37  ;;  %v588_v26 = vrot.slane %v446_v7, %v5911_v34 }
  0xb6   : > { %v5966_v27 = vmul.f32 0.0051020407, %v252_v17  ;;  %v248_v28 = vpop.xlane.xlu0 %247  ;;  %v2305_v30 = vrot.slane %v2283_v13, %v5937_v37  ;;  %v592_v31 = vrot.slane %v446_v7, %v5914_v41  ;;  %v596_v32 = vrot.slane %v446_v7, %v5917_v49 }
  0xb7   : > { %v5971_v35 = vmul.f32 0.0051020407, %v248_v28  ;;  %v2312_v36 = vrot.slane %v2284_v20, %v5937_v37  ;;  %v2313_v39 = vcombine.low %v2291_v23, %v2298_v24  ;;  %v600_v40 = vrot.slane %v446_v7, %v5920_v50 }
  0xb8   : > { %v604_v42 = vrot.slane %v446_v7, %v5925_v0  ;;  %v608_v43 = vrot.slane %v446_v7, %v5928_v9  ;;  %v612_v44 = vrot.slane %v446_v7, %v5931_v21  ;;  %v616_v46 = vrot.slane %v446_v7, %v5934_v29 }
  0xb9   : > { %v260_v47 = vpop.xlane.xlu1 %259  ;;  %v2314_v48 = vcombine.low %v2305_v30, %v2312_v36  ;;  %v2321_v51 = vrot.slane %v2313_v39, %v5937_v37  ;;  %v2330_v52 = vcombine.low %v588_v26, %v592_v31  ;;  %v2331_v55 = vcombine.low %v596_v32, %v600_v40 }
  0xba   : > { %v5980_v57 = vmul.f32 0.0051020407, %v260_v47  ;;  %v256_v10 = vpop.xlane.xlu0 %255  ;;  %v2332_v18 = vcombine.low %v604_v42, %v608_v43  ;;  %v2333_v25 = vcombine.low %v612_v44, %v616_v46  ;;  %v648_v33 = vrot.slane %v5922_v56, %v5934_v29 }
  0xbb   : > { %v5984_v63 = vmul.f32 0.0051020407, %v256_v10  ;;  %v2328_v22 = vrot.slane %v2314_v48, %v5937_v37  ;;  %v2340_v58 = vrot.slane %v2330_v52, %v5937_v37  ;;  %v2347_v59 = vrot.slane %v2331_v55, %v5937_v37 }
  0xbc   : > { %v2354_v60 = vrot.slane %v2332_v18, %v5937_v37  ;;  %v2361_v61 = vrot.slane %v2333_v25, %v5937_v37  ;;  %v2379_v62 = vcombine.low %v620_v38, %v624_v45  ;;  %v2380_v2 = vcombine.low %v628_v53, %v632_v54 }
  0xbd   : > { %v2329_v4 = vcombine.low %v2321_v51, %v2328_v22  ;;  %v268_v5 = vpop.xlane.xlu1 %267  ;;  %v2362_v6 = vcombine.low %v2340_v58, %v2347_v59  ;;  %v2381_v7 = vcombine.low %v636_v14, %v640_v15  ;;  %v2382_v8 = vcombine.low %v644_v16, %v648_v33 }
  0xbe   : > { %v454_v56 = vmul.f32 0.0051020407, %v268_v5  ;;  %v264_v11 = vpop.xlane.xlu0 %263  ;;  %v2363_v12 = vcombine.low %v2354_v60, %v2361_v61  ;;  %v2389_v13 = vrot.slane %v2379_v62, %v5937_v37  ;;  %v2396_v17 = vrot.slane %v2380_v2, %v5937_v37 }
  0xbf   : > { %4928 = vperm.xlu0 %5546, %v2329_v4   ;;  %v5993_v20 = vmul.f32 0.0051020407, %v264_v11  ;;  %v2370_v23 = vrot.slane %v2362_v6, %v5937_v37  ;;  %v2403_v38 = vrot.slane %v2381_v7, %v5937_v37  ;;  %v2410_v45 = vrot.slane %v2382_v8, %v5937_v37 }
  0xc0   : > { %v2377_v53 = vrot.slane %v2363_v12, %v5937_v37  ;;  %v2411_v54 = vcombine.low %v2389_v13, %v2396_v17  ;;  %v652_v14 = vrot.slane %v5951_v1, %v5911_v34  ;;  %v656_v15 = vrot.slane %v5951_v1, %v5914_v41 }
  0xc1   : > { %v276_v16 = vpop.xlane.xlu1 %275  ;;  %v2412_v24 = vcombine.low %v2403_v38, %v2410_v45  ;;  %v660_v26 = vrot.slane %v5951_v1, %v5917_v49  ;;  %v664_v28 = vrot.slane %v5951_v1, %v5920_v50  ;;  %v668_v30 = vrot.slane %v5951_v1, %v5925_v0 }
  0xc2   : > { %v2378_v31 = vcombine.low %v2370_v23, %v2377_v53  ;;  %v6009_v32 = vmul.f32 0.0051020407, %v276_v16  ;;  %v272_v36 = vpop.xlane.xlu0 %271  ;;  %v2419_v39 = vrot.slane %v2411_v54, %v5937_v37  ;;  %v672_v40 = vrot.slane %v5951_v1, %v5928_v9 }
  0xc3   : > { %v6014_v42 = vmul.f32 0.0051020407, %v272_v36  ;;  %v2426_v43 = vrot.slane %v2412_v24, %v5937_v37  ;;  %v676_v44 = vrot.slane %v5951_v1, %v5931_v21  ;;  %v680_v46 = vrot.slane %v5951_v1, %v5934_v29 }
  0xc4   : > { %4931 = vperm.xlu1 %5547, %v2378_v31   ;;  %v2428_v47 = vcombine.low %v652_v14, %v656_v15  ;;  %v2429_v48 = vcombine.low %v660_v26, %v664_v28  ;;  %v2430_v51 = vcombine.low %v668_v30, %v672_v40  ;;  %v844_v52 = vrot.slane %v454_v56, %v5911_v34 }
  0xc5   : > { %v2427_v55 = vcombine.low %v2419_v39, %v2426_v43  ;;  %v284_v10 = vpop.xlane.xlu1 %283  ;;  %v2431_v18 = vcombine.low %v676_v44, %v680_v46  ;;  %v848_v25 = vrot.slane %v454_v56, %v5914_v41  ;;  %v852_v33 = vrot.slane %v454_v56, %v5917_v49 }
  0xc6   : > { %v6024_v22 = vmul.f32 0.0051020407, %v284_v10  ;;  %v280_v58 = vpop.xlane.xlu0 %279  ;;  %v2438_v59 = vrot.slane %v2428_v47, %v5937_v37  ;;  %v2445_v1 = vrot.slane %v2429_v48, %v5937_v37  ;;  %v2452_v60 = vrot.slane %v2430_v51, %v5937_v37 }
  0xc7   : > { %v6029_v61 = vmul.f32 0.0051020407, %v280_v58  ;;  %v2459_v62 = vrot.slane %v2431_v18, %v5937_v37  ;;  %v856_v2 = vrot.slane %v454_v56, %v5920_v50  ;;  %v860_v4 = vrot.slane %v454_v56, %v5925_v0 }
  0xc8   : > { %4934 = vperm.xlu1 %5547, %v2427_v55   ;;  %v2460_v5 = vcombine.low %v2438_v59, %v2445_v1  ;;  %v864_v6 = vrot.slane %v454_v56, %v5928_v9  ;;  %v868_v7 = vrot.slane %v454_v56, %v5931_v21  ;;  %v872_v8 = vrot.slane %v454_v56, %v5934_v29 }
  0xc9   : > { %v2461_v11 = vcombine.low %v2452_v60, %v2459_v62  ;;  %v292_v12 = vpop.xlane.xlu1 %291  ;;  %v2722_v13 = vcombine.low %v844_v52, %v848_v25  ;;  %v2723_v17 = vcombine.low %v852_v33, %v856_v2  ;;  %v684_v23 = vrot.slane %v5971_v35, %v5911_v34 }
  0xca   : > { %v2468_v38 = vrot.slane %v2460_v5, %v5937_v37  ;;  %v6040_v45 = vmul.f32 0.0051020407, %v292_v12  ;;  %v288_v53 = vpop.xlane.xlu0 %287  ;;  %v2724_v54 = vcombine.low %v860_v4, %v864_v6  ;;  %v2725_v14 = vcombine.low %v868_v7, %v872_v8 }
  0xcb   : > { %v2475_v15 = vrot.slane %v2461_v11, %v5937_v37  ;;  %v6043_v16 = vmul.f32 0.0051020407, %v288_v53  ;;  %v2732_v56 = vrot.slane %v2722_v13, %v5937_v37  ;;  %v2739_v24 = vrot.slane %v2723_v17, %v5937_v37 }
  0xcc   : > { %v2746_v26 = vrot.slane %v2724_v54, %v5937_v37  ;;  %v2753_v28 = vrot.slane %v2725_v14, %v5937_v37  ;;  %v688_v30 = vrot.slane %v5971_v35, %v5914_v41  ;;  %v692_v31 = vrot.slane %v5971_v35, %v5917_v49 }
  0xcd   : > { %v2476_v36 = vcombine.low %v2468_v38, %v2475_v15  ;;  %v2754_v39 = vcombine.low %v2732_v56, %v2739_v24  ;;  %v696_v40 = vrot.slane %v5971_v35, %v5920_v50  ;;  %v700_v43 = vrot.slane %v5971_v35, %v5925_v0  ;;  %v300_v44 = vpop.xlane.xlu1 %299 }
  0xce   : > { %v2755_v46 = vcombine.low %v2746_v26, %v2753_v28  ;;  %v704_v47 = vrot.slane %v5971_v35, %v5928_v9  ;;  %v708_v48 = vrot.slane %v5971_v35, %v5931_v21  ;;  %v712_v51 = vrot.slane %v5971_v35, %v5934_v29  ;;  %v296_v25 = vpop.xlane.xlu0 %295 }
  0xcf   : > { %4937 = vperm.xlu1 %5547, %v2476_v36   ;;  %v2762_v52 = vrot.slane %v2754_v39, %v5937_v37  ;;  %v2477_v55 = vcombine.low %v684_v23, %v688_v30  ;;  %v2478_v10 = vcombine.low %v692_v31, %v696_v40  ;;  %v6064_v18 = vmul.f32 0.0051020407, %v300_v44 }
  0xd0   : > { %v2769_v33 = vrot.slane %v2755_v46, %v5937_v37  ;;  %v2479_v58 = vcombine.low %v700_v43, %v704_v47  ;;  %v2480_v59 = vcombine.low %v708_v48, %v712_v51  ;;  %v6067_v1 = vmul.f32 0.0051020407, %v296_v25 }
  0xd1   : > { %v2487_v60 = vrot.slane %v2477_v55, %v5937_v37  ;;  %v2494_v62 = vrot.slane %v2478_v10, %v5937_v37  ;;  %v908_v35 = vrot.slane %v6009_v32, %v5911_v34  ;;  %v912_v2 = vrot.slane %v6009_v32, %v5914_v41  ;;  %v308_v40 = vpop.xlane.xlu1 %307 }
  0xd2   : > { %v2770_v4 = vcombine.low %v2762_v52, %v2769_v33  ;;  %v2501_v5 = vrot.slane %v2479_v58, %v5937_v37  ;;  %v2508_v6 = vrot.slane %v2480_v59, %v5937_v37  ;;  %v916_v7 = vrot.slane %v6009_v32, %v5917_v49  ;;  %v304_v59 = vpop.xlane.xlu0 %303 }
  0xd3   : > { %v2509_v8 = vcombine.low %v2487_v60, %v2494_v62  ;;  %v920_v11 = vrot.slane %v6009_v32, %v5920_v50  ;;  %v924_v12 = vrot.slane %v6009_v32, %v5925_v0  ;;  %v928_v13 = vrot.slane %v6009_v32, %v5928_v9 }
  0xd4   : > { %4955 = vperm.xlu0 %5546, %v2770_v4   ;;  %v2510_v17 = vcombine.low %v2501_v5, %v2508_v6  ;;  %v932_v23 = vrot.slane %v6009_v32, %v5931_v21  ;;  %v936_v38 = vrot.slane %v6009_v32, %v5934_v29  ;;  %v2820_v53 = vcombine.low %v908_v35, %v912_v2 }
  0xd5   : > { %v2517_v54 = vrot.slane %v2509_v8, %v5937_v37  ;;  %v2821_v14 = vcombine.low %v916_v7, %v920_v11  ;;  %v2822_v15 = vcombine.low %v924_v12, %v928_v13  ;;  %v716_v56 = vrot.slane %v5966_v27, %v5911_v34 }
  0xd6   : > { %v2524_v24 = vrot.slane %v2510_v17, %v5937_v37  ;;  %v2823_v26 = vcombine.low %v932_v23, %v936_v38  ;;  %v2830_v28 = vrot.slane %v2820_v53, %v5937_v37  ;;  %v720_v30 = vrot.slane %v5966_v27, %v5914_v41 }
  0xd7   : > { %v2837_v31 = vrot.slane %v2821_v14, %v5937_v37  ;;  %v2844_v32 = vrot.slane %v2822_v15, %v5937_v37  ;;  %v724_v36 = vrot.slane %v5966_v27, %v5917_v49  ;;  %v728_v39 = vrot.slane %v5966_v27, %v5920_v50 }
  0xd8   : > { %v2525_v43 = vcombine.low %v2517_v54, %v2524_v24  ;;  %v2851_v44 = vrot.slane %v2823_v26, %v5937_v37  ;;  %v732_v46 = vrot.slane %v5966_v27, %v5925_v0  ;;  %v736_v47 = vrot.slane %v5966_v27, %v5928_v9 }
  0xd9   : > { %v2852_v48 = vcombine.low %v2830_v28, %v2837_v31  ;;  %v740_v51 = vrot.slane %v5966_v27, %v5931_v21  ;;  %v744_v52 = vrot.slane %v5966_v27, %v5934_v29  ;;  %v2526_v55 = vcombine.low %v716_v56, %v720_v30 }
  0xda   : > { %4940 = vperm.xlu1 %5547, %v2525_v43   ;;  %v2853_v10 = vcombine.low %v2844_v32, %v2851_v44  ;;  %v2527_v25 = vcombine.low %v724_v36, %v728_v39  ;;  %v2528_v33 = vcombine.low %v732_v46, %v736_v47  ;;  %v6111_v58 = vmul.f32 0.0051020407, %v308_v40  ;;  %v316_v44 = vpop.xlane.xlu1 %315 }
  0xdb   : > { %v2860_v60 = vrot.slane %v2852_v48, %v5937_v37  ;;  %v2529_v62 = vcombine.low %v740_v51, %v744_v52  ;;  %v2536_v35 = vrot.slane %v2526_v55, %v5937_v37  ;;  %v6115_v2 = vmul.f32 0.0051020407, %v304_v59 }
  0xdc   : > { %v2867_v4 = vrot.slane %v2853_v10, %v5937_v37  ;;  %v2543_v5 = vrot.slane %v2527_v25, %v5937_v37  ;;  %v2550_v27 = vrot.slane %v2528_v33, %v5937_v37  ;;  %v972_v6 = vrot.slane %v6024_v22, %v5911_v34 }
  0xdd   : > { %v2557_v7 = vrot.slane %v2529_v62, %v5937_v37  ;;  %v976_v8 = vrot.slane %v6024_v22, %v5914_v41  ;;  %v980_v11 = vrot.slane %v6024_v22, %v5917_v49  ;;  %v984_v12 = vrot.slane %v6024_v22, %v5920_v50 }
  0xde   : > { %v2868_v13 = vcombine.low %v2860_v60, %v2867_v4  ;;  %v2558_v17 = vcombine.low %v2536_v35, %v2543_v5  ;;  %v988_v23 = vrot.slane %v6024_v22, %v5925_v0  ;;  %v992_v38 = vrot.slane %v6024_v22, %v5928_v9  ;;  %v312_v35 = vpop.xlane.xlu0 %311 }
  0xdf   : > { %v2559_v53 = vcombine.low %v2550_v27, %v2557_v7  ;;  %v996_v54 = vrot.slane %v6024_v22, %v5931_v21  ;;  %v1000_v14 = vrot.slane %v6024_v22, %v5934_v29  ;;  %v2918_v15 = vcombine.low %v972_v6, %v976_v8 }
  0xe0   : > { %4961 = vperm.xlu0 %5546, %v2868_v13   ;;  %v2566_v56 = vrot.slane %v2558_v17, %v5937_v37  ;;  %v2919_v24 = vcombine.low %v980_v11, %v984_v12  ;;  %v2920_v26 = vcombine.low %v988_v23, %v992_v38  ;;  %v748_v28 = vrot.slane %v5984_v63, %v5911_v34 }
  0xe1   : > { %v2573_v30 = vrot.slane %v2559_v53, %v5937_v37  ;;  %v2921_v31 = vcombine.low %v996_v54, %v1000_v14  ;;  %v2928_v32 = vrot.slane %v2918_v15, %v5937_v37  ;;  %v752_v36 = vrot.slane %v5984_v63, %v5914_v41 }
  0xe2   : > { %v2935_v39 = vrot.slane %v2919_v24, %v5937_v37  ;;  %v2942_v22 = vrot.slane %v2920_v26, %v5937_v37  ;;  %v756_v40 = vrot.slane %v5984_v63, %v5917_v49  ;;  %v760_v43 = vrot.slane %v5984_v63, %v5920_v50 }
  0xe3   : > { %v2574_v46 = vcombine.low %v2566_v56, %v2573_v30  ;;  %v2949_v47 = vrot.slane %v2921_v31, %v5937_v37  ;;  %v764_v48 = vrot.slane %v5984_v63, %v5925_v0  ;;  %v768_v51 = vrot.slane %v5984_v63, %v5928_v9 }
  0xe4   : > { %v2950_v52 = vcombine.low %v2928_v32, %v2935_v39  ;;  %v772_v55 = vrot.slane %v5984_v63, %v5931_v21  ;;  %v776_v10 = vrot.slane %v5984_v63, %v5934_v29  ;;  %v2575_v25 = vcombine.low %v748_v28, %v752_v36 }
  0xe5   : > { %4943 = vperm.xlu1 %5547, %v2574_v46   ;;  %v2951_v33 = vcombine.low %v2942_v22, %v2949_v47  ;;  %v2576_v59 = vcombine.low %v756_v40, %v760_v43  ;;  %v2577_v60 = vcombine.low %v764_v48, %v768_v51  ;;  %v6159_v62 = vmul.f32 0.0051020407, %v316_v44  ;;  %v324_v47 = vpop.xlane.xlu1 %323 }
  0xe6   : > { %v2958_v4 = vrot.slane %v2950_v52, %v5937_v37  ;;  %v2578_v5 = vcombine.low %v772_v55, %v776_v10  ;;  %v2585_v27 = vrot.slane %v2575_v25, %v5937_v37  ;;  %v6163_v6 = vmul.f32 0.0051020407, %v312_v35 }
  0xe7   : > { %v2965_v7 = vrot.slane %v2951_v33, %v5937_v37  ;;  %v2592_v8 = vrot.slane %v2576_v59, %v5937_v37  ;;  %v2599_v63 = vrot.slane %v2577_v60, %v5937_v37  ;;  %v1036_v11 = vrot.slane %v6040_v45, %v5911_v34 }
  0xe8   : > { %v2606_v12 = vrot.slane %v2578_v5, %v5937_v37  ;;  %v1040_v13 = vrot.slane %v6040_v45, %v5914_v41  ;;  %v1044_v17 = vrot.slane %v6040_v45, %v5917_v49  ;;  %v1048_v23 = vrot.slane %v6040_v45, %v5920_v50 }
  0xe9   : > { %v2966_v38 = vcombine.low %v2958_v4, %v2965_v7  ;;  %v2607_v53 = vcombine.low %v2585_v27, %v2592_v8  ;;  %v1052_v54 = vrot.slane %v6040_v45, %v5925_v0  ;;  %v1056_v14 = vrot.slane %v6040_v45, %v5928_v9  ;;  %v320_v27 = vpop.xlane.xlu0 %319 }
  0xea   : > { %v2608_v15 = vcombine.low %v2599_v63, %v2606_v12  ;;  %v1060_v56 = vrot.slane %v6040_v45, %v5931_v21  ;;  %v1064_v24 = vrot.slane %v6040_v45, %v5934_v29  ;;  %v3016_v26 = vcombine.low %v1036_v11, %v1040_v13 }
  0xeb   : > { %4967 = vperm.xlu0 %5546, %v2966_v38   ;;  %v2615_v28 = vrot.slane %v2607_v53, %v5937_v37  ;;  %v3017_v30 = vcombine.low %v1044_v17, %v1048_v23  ;;  %v3018_v31 = vcombine.low %v1052_v54, %v1056_v14  ;;  %v780_v32 = vrot.slane %v5980_v57, %v5911_v34 }
  0xec   : > { %v2622_v36 = vrot.slane %v2608_v15, %v5937_v37  ;;  %v3019_v39 = vcombine.low %v1060_v56, %v1064_v24  ;;  %v3026_v22 = vrot.slane %v3016_v26, %v5937_v37  ;;  %v784_v40 = vrot.slane %v5980_v57, %v5914_v41 }
  0xed   : > { %v3033_v43 = vrot.slane %v3017_v30, %v5937_v37  ;;  %v3040_v45 = vrot.slane %v3018_v31, %v5937_v37  ;;  %v788_v44 = vrot.slane %v5980_v57, %v5917_v49  ;;  %v792_v46 = vrot.slane %v5980_v57, %v5920_v50 }
  0xee   : > { %v2623_v48 = vcombine.low %v2615_v28, %v2622_v36  ;;  %v3047_v51 = vrot.slane %v3019_v39, %v5937_v37  ;;  %v796_v52 = vrot.slane %v5980_v57, %v5925_v0  ;;  %v800_v55 = vrot.slane %v5980_v57, %v5928_v9 }
  0xef   : > { %v3048_v10 = vcombine.low %v3026_v22, %v3033_v43  ;;  %v804_v25 = vrot.slane %v5980_v57, %v5931_v21  ;;  %v808_v33 = vrot.slane %v5980_v57, %v5934_v29  ;;  %v2624_v59 = vcombine.low %v780_v32, %v784_v40 }
  0xf0   : > { %4946 = vperm.xlu1 %5547, %v2623_v48   ;;  %v3049_v60 = vcombine.low %v3040_v45, %v3047_v51  ;;  %v2625_v35 = vcombine.low %v788_v44, %v792_v46  ;;  %v2626_v4 = vcombine.low %v796_v52, %v800_v55  ;;  %v6207_v5 = vmul.f32 0.0051020407, %v324_v47  ;;  %v332_v51 = vpop.xlane.xlu1 %331 }
  0xf1   : > { %v3056_v7 = vrot.slane %v3048_v10, %v5937_v37  ;;  %v2627_v8 = vcombine.low %v804_v25, %v808_v33  ;;  %v2634_v63 = vrot.slane %v2624_v59, %v5937_v37  ;;  %v6211_v11 = vmul.f32 0.0051020407, %v320_v27 }
  0xf2   : > { %v3063_v12 = vrot.slane %v3049_v60, %v5937_v37  ;;  %v2641_v13 = vrot.slane %v2625_v35, %v5937_v37  ;;  %v2648_v57 = vrot.slane %v2626_v4, %v5937_v37  ;;  %v1100_v17 = vrot.slane %v6064_v18, %v5911_v34 }
  0xf3   : > { %v2655_v23 = vrot.slane %v2627_v8, %v5937_v37  ;;  %v1104_v38 = vrot.slane %v6064_v18, %v5914_v41  ;;  %v1108_v53 = vrot.slane %v6064_v18, %v5917_v49  ;;  %v1112_v54 = vrot.slane %v6064_v18, %v5920_v50 }
  0xf4   : > { %v3064_v14 = vcombine.low %v3056_v7, %v3063_v12  ;;  %v2656_v15 = vcombine.low %v2634_v63, %v2641_v13  ;;  %v1116_v56 = vrot.slane %v6064_v18, %v5925_v0  ;;  %v1120_v24 = vrot.slane %v6064_v18, %v5928_v9  ;;  %v328_v63 = vpop.xlane.xlu0 %327 }
  0xf5   : > { %v2657_v26 = vcombine.low %v2648_v57, %v2655_v23  ;;  %v1124_v28 = vrot.slane %v6064_v18, %v5931_v21  ;;  %v1128_v30 = vrot.slane %v6064_v18, %v5934_v29  ;;  %v3114_v31 = vcombine.low %v1100_v17, %v1104_v38 }
  0xf6   : > { %4973 = vperm.xlu0 %5546, %v3064_v14   ;;  %v2664_v32 = vrot.slane %v2656_v15, %v5937_v37  ;;  %v3115_v36 = vcombine.low %v1108_v53, %v1112_v54  ;;  %v3116_v39 = vcombine.low %v1116_v56, %v1120_v24  ;;  %v812_v22 = vrot.slane %v5993_v20, %v5911_v34 }
  0xf7   : > { %v2671_v40 = vrot.slane %v2657_v26, %v5937_v37  ;;  %v3117_v43 = vcombine.low %v1124_v28, %v1128_v30  ;;  %v3124_v45 = vrot.slane %v3114_v31, %v5937_v37  ;;  %v816_v44 = vrot.slane %v5993_v20, %v5914_v41 }
  0xf8   : > { %v3131_v46 = vrot.slane %v3115_v36, %v5937_v37  ;;  %v3138_v18 = vrot.slane %v3116_v39, %v5937_v37  ;;  %v820_v47 = vrot.slane %v5993_v20, %v5917_v49  ;;  %v824_v48 = vrot.slane %v5993_v20, %v5920_v50 }
  0xf9   : > { %v2672_v52 = vcombine.low %v2664_v32, %v2671_v40  ;;  %v3145_v55 = vrot.slane %v3117_v43, %v5937_v37  ;;  %v828_v10 = vrot.slane %v5993_v20, %v5925_v0  ;;  %v832_v25 = vrot.slane %v5993_v20, %v5928_v9 }
  0xfa   : > { %v3146_v33 = vcombine.low %v3124_v45, %v3131_v46  ;;  %v836_v59 = vrot.slane %v5993_v20, %v5931_v21  ;;  %v840_v60 = vrot.slane %v5993_v20, %v5934_v29  ;;  %v2673_v35 = vcombine.low %v812_v22, %v816_v44 }
  0xfb   : > { %4949 = vperm.xlu1 %5547, %v2672_v52   ;;  %v3147_v4 = vcombine.low %v3138_v18, %v3145_v55  ;;  %v2674_v27 = vcombine.low %v820_v47, %v824_v48  ;;  %v2675_v7 = vcombine.low %v828_v10, %v832_v25  ;;  %v6255_v8 = vmul.f32 0.0051020407, %v332_v51  ;;  %v340_v55 = vpop.xlane.xlu1 %339 }
  0xfc   : > { %v3154_v12 = vrot.slane %v3146_v33, %v5937_v37  ;;  %v2676_v13 = vcombine.low %v836_v59, %v840_v60  ;;  %v2683_v57 = vrot.slane %v2673_v35, %v5937_v37  ;;  %v6259_v17 = vmul.f32 0.0051020407, %v328_v63 }
  0xfd   : > { %v3161_v23 = vrot.slane %v3147_v4, %v5937_v37  ;;  %v2690_v38 = vrot.slane %v2674_v27, %v5937_v37  ;;  %v2697_v20 = vrot.slane %v2675_v7, %v5937_v37  ;;  %v1164_v53 = vrot.slane %v6111_v58, %v5911_v34 }
  0xfe   : > { %v2704_v54 = vrot.slane %v2676_v13, %v5937_v37  ;;  %v1168_v14 = vrot.slane %v6111_v58, %v5914_v41  ;;  %v1172_v15 = vrot.slane %v6111_v58, %v5917_v49  ;;  %v1176_v56 = vrot.slane %v6111_v58, %v5920_v50 }
  0xff   : > { %v3162_v24 = vcombine.low %v3154_v12, %v3161_v23  ;;  %v2705_v26 = vcombine.low %v2683_v57, %v2690_v38  ;;  %v1180_v28 = vrot.slane %v6111_v58, %v5925_v0  ;;  %v1184_v30 = vrot.slane %v6111_v58, %v5928_v9  ;;  %v336_v57 = vpop.xlane.xlu0 %335 }
 0x100   : > { %v2706_v31 = vcombine.low %v2697_v20, %v2704_v54  ;;  %v1188_v32 = vrot.slane %v6111_v58, %v5931_v21  ;;  %v1192_v36 = vrot.slane %v6111_v58, %v5934_v29  ;;  %v3212_v39 = vcombine.low %v1164_v53, %v1168_v14 }
 0x101   : > { %4979 = vperm.xlu0 %5546, %v3162_v24   ;;  %v2713_v22 = vrot.slane %v2705_v26, %v5937_v37  ;;  %v3213_v40 = vcombine.low %v1172_v15, %v1176_v56  ;;  %v3214_v43 = vcombine.low %v1180_v28, %v1184_v30  ;;  %v876_v45 = vrot.slane %v6014_v42, %v5911_v34 }
 0x102   : > { %v2720_v44 = vrot.slane %v2706_v31, %v5937_v37  ;;  %v3215_v46 = vcombine.low %v1188_v32, %v1192_v36  ;;  %v3222_v18 = vrot.slane %v3212_v39, %v5937_v37  ;;  %v880_v47 = vrot.slane %v6014_v42, %v5914_v41 }
 0x103   : > { %v3229_v48 = vrot.slane %v3213_v40, %v5937_v37  ;;  %v3236_v58 = vrot.slane %v3214_v43, %v5937_v37  ;;  %v884_v51 = vrot.slane %v6014_v42, %v5917_v49  ;;  %v888_v52 = vrot.slane %v6014_v42, %v5920_v50 }
 0x104   : > { %v2721_v10 = vcombine.low %v2713_v22, %v2720_v44  ;;  %v3243_v25 = vrot.slane %v3215_v46, %v5937_v37  ;;  %v892_v33 = vrot.slane %v6014_v42, %v5925_v0  ;;  %v896_v59 = vrot.slane %v6014_v42, %v5928_v9 }
 0x105   : > { %v3244_v60 = vcombine.low %v3222_v18, %v3229_v48  ;;  %v900_v35 = vrot.slane %v6014_v42, %v5931_v21  ;;  %v904_v4 = vrot.slane %v6014_v42, %v5934_v29  ;;  %v2771_v27 = vcombine.low %v876_v45, %v880_v47 }
 0x106   : > { %4952 = vperm.xlu1 %5547, %v2721_v10   ;;  %v3245_v7 = vcombine.low %v3236_v58, %v3243_v25  ;;  %v2772_v63 = vcombine.low %v884_v51, %v888_v52  ;;  %v2773_v12 = vcombine.low %v892_v33, %v896_v59  ;;  %v6303_v13 = vmul.f32 0.0051020407, %v340_v55  ;;  %v348_v25 = vpop.xlane.xlu1 %347 }
 0x107   : > { %v3252_v23 = vrot.slane %v3244_v60, %v5937_v37  ;;  %v2774_v38 = vcombine.low %v900_v35, %v904_v4  ;;  %v2781_v20 = vrot.slane %v2771_v27, %v5937_v37  ;;  %v6307_v53 = vmul.f32 0.0051020407, %v336_v57 }
 0x108   : > { %v3259_v54 = vrot.slane %v3245_v7, %v5937_v37  ;;  %v2788_v14 = vrot.slane %v2772_v63, %v5937_v37  ;;  %v2795_v42 = vrot.slane %v2773_v12, %v5937_v37  ;;  %v1228_v15 = vrot.slane %v6159_v62, %v5911_v34 }
 0x109   : > { %v2802_v56 = vrot.slane %v2774_v38, %v5937_v37  ;;  %v1232_v24 = vrot.slane %v6159_v62, %v5914_v41  ;;  %v1236_v26 = vrot.slane %v6159_v62, %v5917_v49  ;;  %v1240_v28 = vrot.slane %v6159_v62, %v5920_v50 }
 0x10a   : > { %v3260_v30 = vcombine.low %v3252_v23, %v3259_v54  ;;  %v2803_v31 = vcombine.low %v2781_v20, %v2788_v14  ;;  %v1244_v32 = vrot.slane %v6159_v62, %v5925_v0  ;;  %v1248_v36 = vrot.slane %v6159_v62, %v5928_v9  ;;  %v344_v20 = vpop.xlane.xlu0 %343 }
 0x10b   : > { %v2804_v39 = vcombine.low %v2795_v42, %v2802_v56  ;;  %v1252_v22 = vrot.slane %v6159_v62, %v5931_v21  ;;  %v1256_v40 = vrot.slane %v6159_v62, %v5934_v29  ;;  %v3310_v43 = vcombine.low %v1228_v15, %v1232_v24 }
 0x10c   : > { %4985 = vperm.xlu0 %5546, %v3260_v30   ;;  %v2811_v45 = vrot.slane %v2803_v31, %v5937_v37  ;;  %v3311_v44 = vcombine.low %v1236_v26, %v1240_v28  ;;  %v3312_v46 = vcombine.low %v1244_v32, %v1248_v36  ;;  %v940_v18 = vrot.slane %v6029_v61, %v5911_v34 }
 0x10d   : > { %v2818_v47 = vrot.slane %v2804_v39, %v5937_v37  ;;  %v3313_v48 = vcombine.low %v1252_v22, %v1256_v40  ;;  %v3320_v58 = vrot.slane %v3310_v43, %v5937_v37  ;;  %v944_v51 = vrot.slane %v6029_v61, %v5914_v41 }
 0x10e   : > { %v3327_v52 = vrot.slane %v3311_v44, %v5937_v37  ;;  %v3334_v62 = vrot.slane %v3312_v46, %v5937_v37  ;;  %v948_v55 = vrot.slane %v6029_v61, %v5917_v49  ;;  %v952_v10 = vrot.slane %v6029_v61, %v5920_v50 }
 0x10f   : > { %v2819_v33 = vcombine.low %v2811_v45, %v2818_v47  ;;  %v3341_v59 = vrot.slane %v3313_v48, %v5937_v37  ;;  %v956_v60 = vrot.slane %v6029_v61, %v5925_v0  ;;  %v960_v35 = vrot.slane %v6029_v61, %v5928_v9 }
 0x110   : > { %v3342_v4 = vcombine.low %v3320_v58, %v3327_v52  ;;  %v964_v27 = vrot.slane %v6029_v61, %v5931_v21  ;;  %v968_v7 = vrot.slane %v6029_v61, %v5934_v29  ;;  %v2869_v63 = vcombine.low %v940_v18, %v944_v51 }
 0x111   : > { %4958 = vperm.xlu1 %5547, %v2819_v33   ;;  %v3343_v12 = vcombine.low %v3334_v62, %v3341_v59  ;;  %v2870_v57 = vcombine.low %v948_v55, %v952_v10  ;;  %v2871_v23 = vcombine.low %v956_v60, %v960_v35  ;;  %v6351_v38 = vmul.f32 0.0051020407, %v348_v25  ;;  %v356_v59 = vpop.xlane.xlu1 %355 }
 0x112   : > { %v3350_v54 = vrot.slane %v3342_v4, %v5937_v37  ;;  %v2872_v14 = vcombine.low %v964_v27, %v968_v7  ;;  %v2879_v42 = vrot.slane %v2869_v63, %v5937_v37  ;;  %v6355_v15 = vmul.f32 0.0051020407, %v344_v20 }
 0x113   : > { %v3357_v56 = vrot.slane %v3343_v12, %v5937_v37  ;;  %v2886_v24 = vrot.slane %v2870_v57, %v5937_v37  ;;  %v2893_v61 = vrot.slane %v2871_v23, %v5937_v37  ;;  %v1292_v26 = vrot.slane %v6207_v5, %v5911_v34 }
 0x114   : > { %v2900_v28 = vrot.slane %v2872_v14, %v5937_v37  ;;  %v1296_v30 = vrot.slane %v6207_v5, %v5914_v41  ;;  %v1300_v31 = vrot.slane %v6207_v5, %v5917_v49  ;;  %v1304_v32 = vrot.slane %v6207_v5, %v5920_v50 }
 0x115   : > { %v3358_v36 = vcombine.low %v3350_v54, %v3357_v56  ;;  %v2901_v39 = vcombine.low %v2879_v42, %v2886_v24  ;;  %v1308_v22 = vrot.slane %v6207_v5, %v5925_v0  ;;  %v1312_v40 = vrot.slane %v6207_v5, %v5928_v9  ;;  %v352_v42 = vpop.xlane.xlu0 %351 }
 0x116   : > { %v2902_v43 = vcombine.low %v2893_v61, %v2900_v28  ;;  %v1316_v45 = vrot.slane %v6207_v5, %v5931_v21  ;;  %v1320_v44 = vrot.slane %v6207_v5, %v5934_v29  ;;  %v3408_v46 = vcombine.low %v1292_v26, %v1296_v30 }
 0x117   : > { %4991 = vperm.xlu0 %5546, %v3358_v36   ;;  %v2909_v18 = vrot.slane %v2901_v39, %v5937_v37  ;;  %v3409_v47 = vcombine.low %v1300_v31, %v1304_v32  ;;  %v3410_v48 = vcombine.low %v1308_v22, %v1312_v40  ;;  %v1004_v58 = vrot.slane %v6043_v16, %v5911_v34 }
 0x118   : > { %v2916_v51 = vrot.slane %v2902_v43, %v5937_v37  ;;  %v3411_v52 = vcombine.low %v1316_v45, %v1320_v44  ;;  %v3418_v62 = vrot.slane %v3408_v46, %v5937_v37  ;;  %v1008_v55 = vrot.slane %v6043_v16, %v5914_v41 }
 0x119   : > { %v3425_v10 = vrot.slane %v3409_v47, %v5937_v37  ;;  %v3432_v5 = vrot.slane %v3410_v48, %v5937_v37  ;;  %v1012_v25 = vrot.slane %v6043_v16, %v5917_v49  ;;  %v1016_v33 = vrot.slane %v6043_v16, %v5920_v50 }
 0x11a   : > { %v2917_v60 = vcombine.low %v2909_v18, %v2916_v51  ;;  %v3439_v35 = vrot.slane %v3411_v52, %v5937_v37  ;;  %v1020_v4 = vrot.slane %v6043_v16, %v5925_v0  ;;  %v1024_v27 = vrot.slane %v6043_v16, %v5928_v9 }
 0x11b   : > { %v3440_v7 = vcombine.low %v3418_v62, %v3425_v10  ;;  %v1028_v63 = vrot.slane %v6043_v16, %v5931_v21  ;;  %v1032_v12 = vrot.slane %v6043_v16, %v5934_v29  ;;  %v2967_v57 = vcombine.low %v1004_v58, %v1008_v55 }
 0x11c   : > { %4964 = vperm.xlu1 %5547, %v2917_v60   ;;  %v3441_v23 = vcombine.low %v3432_v5, %v3439_v35  ;;  %v2968_v20 = vcombine.low %v1012_v25, %v1016_v33  ;;  %v2969_v54 = vcombine.low %v1020_v4, %v1024_v27  ;;  %v6399_v14 = vmul.f32 0.0051020407, %v356_v59  ;;  %v364_v35 = vpop.xlane.xlu1 %363 }
 0x11d   : > { %v3448_v56 = vrot.slane %v3440_v7, %v5937_v37  ;;  %v2970_v24 = vcombine.low %v1028_v63, %v1032_v12  ;;  %v2977_v61 = vrot.slane %v2967_v57, %v5937_v37  ;;  %v6403_v26 = vmul.f32 0.0051020407, %v352_v42 }
 0x11e   : > { %v3455_v28 = vrot.slane %v3441_v23, %v5937_v37  ;;  %v2984_v30 = vrot.slane %v2968_v20, %v5937_v37  ;;  %v2991_v16 = vrot.slane %v2969_v54, %v5937_v37  ;;  %v1356_v31 = vrot.slane %v6255_v8, %v5911_v34 }
 0x11f   : > { %v2998_v32 = vrot.slane %v2970_v24, %v5937_v37  ;;  %v1360_v36 = vrot.slane %v6255_v8, %v5914_v41  ;;  %v1364_v39 = vrot.slane %v6255_v8, %v5917_v49  ;;  %v1368_v22 = vrot.slane %v6255_v8, %v5920_v50 }
 0x120   : > { %v3456_v40 = vcombine.low %v3448_v56, %v3455_v28  ;;  %v2999_v43 = vcombine.low %v2977_v61, %v2984_v30  ;;  %v1372_v45 = vrot.slane %v6255_v8, %v5925_v0  ;;  %v1376_v44 = vrot.slane %v6255_v8, %v5928_v9  ;;  %v360_v61 = vpop.xlane.xlu0 %359 }
 0x121   : > { %v3000_v46 = vcombine.low %v2991_v16, %v2998_v32  ;;  %v1380_v18 = vrot.slane %v6255_v8, %v5931_v21  ;;  %v1384_v47 = vrot.slane %v6255_v8, %v5934_v29  ;;  %v3506_v48 = vcombine.low %v1356_v31, %v1360_v36 }
 0x122   : > { %4997 = vperm.xlu0 %5546, %v3456_v40   ;;  %v3007_v58 = vrot.slane %v2999_v43, %v5937_v37  ;;  %v3507_v51 = vcombine.low %v1364_v39, %v1368_v22  ;;  %v3508_v52 = vcombine.low %v1372_v45, %v1376_v44  ;;  %v1068_v62 = vrot.slane %v6067_v1, %v5911_v34 }
 0x123   : > { %v3014_v55 = vrot.slane %v3000_v46, %v5937_v37  ;;  %v3509_v10 = vcombine.low %v1380_v18, %v1384_v47  ;;  %v3516_v5 = vrot.slane %v3506_v48, %v5937_v37  ;;  %v1072_v25 = vrot.slane %v6067_v1, %v5914_v41 }
 0x124   : > { %v3523_v33 = vrot.slane %v3507_v51, %v5937_v37  ;;  %v3530_v8 = vrot.slane %v3508_v52, %v5937_v37  ;;  %v1076_v59 = vrot.slane %v6067_v1, %v5917_v49  ;;  %v1080_v60 = vrot.slane %v6067_v1, %v5920_v50 }
 0x125   : > { %v3015_v4 = vcombine.low %v3007_v58, %v3014_v55  ;;  %v3537_v27 = vrot.slane %v3509_v10, %v5937_v37  ;;  %v1084_v7 = vrot.slane %v6067_v1, %v5925_v0  ;;  %v1088_v63 = vrot.slane %v6067_v1, %v5928_v9 }
 0x126   : > { %v3538_v12 = vcombine.low %v3516_v5, %v3523_v33  ;;  %v1092_v57 = vrot.slane %v6067_v1, %v5931_v21  ;;  %v1096_v23 = vrot.slane %v6067_v1, %v5934_v29  ;;  %v3065_v20 = vcombine.low %v1068_v62, %v1072_v25 }
 0x127   : > { %4970 = vperm.xlu1 %5547, %v3015_v4   ;;  %v3539_v54 = vcombine.low %v3530_v8, %v3537_v27  ;;  %v3066_v42 = vcombine.low %v1076_v59, %v1080_v60  ;;  %v3067_v56 = vcombine.low %v1084_v7, %v1088_v63  ;;  %v6447_v24 = vmul.f32 0.0051020407, %v364_v35  ;;  %v372_v27 = vpop.xlane.xlu1 %371 }
 0x128   : > { %v3546_v28 = vrot.slane %v3538_v12, %v5937_v37  ;;  %v3068_v30 = vcombine.low %v1092_v57, %v1096_v23  ;;  %v3075_v16 = vrot.slane %v3065_v20, %v5937_v37  ;;  %v6451_v31 = vmul.f32 0.0051020407, %v360_v61 }
 0x129   : > { %v3553_v32 = vrot.slane %v3539_v54, %v5937_v37  ;;  %v3082_v36 = vrot.slane %v3066_v42, %v5937_v37  ;;  %v3089_v1 = vrot.slane %v3067_v56, %v5937_v37  ;;  %v1420_v39 = vrot.slane %v6303_v13, %v5911_v34 }
 0x12a   : > { %v3096_v22 = vrot.slane %v3068_v30, %v5937_v37  ;;  %v1424_v40 = vrot.slane %v6303_v13, %v5914_v41  ;;  %v1428_v43 = vrot.slane %v6303_v13, %v5917_v49  ;;  %v1432_v45 = vrot.slane %v6303_v13, %v5920_v50 }
 0x12b   : > { %v3554_v44 = vcombine.low %v3546_v28, %v3553_v32  ;;  %v3097_v46 = vcombine.low %v3075_v16, %v3082_v36  ;;  %v1436_v18 = vrot.slane %v6303_v13, %v5925_v0  ;;  %v1440_v47 = vrot.slane %v6303_v13, %v5928_v9  ;;  %v368_v16 = vpop.xlane.xlu0 %367 }
 0x12c   : > { %v3098_v48 = vcombine.low %v3089_v1, %v3096_v22  ;;  %v1444_v58 = vrot.slane %v6303_v13, %v5931_v21  ;;  %v1448_v51 = vrot.slane %v6303_v13, %v5934_v29  ;;  %v3604_v52 = vcombine.low %v1420_v39, %v1424_v40 }
 0x12d   : > { %5003 = vperm.xlu0 %5546, %v3554_v44   ;;  %v3105_v62 = vrot.slane %v3097_v46, %v5937_v37  ;;  %v3605_v55 = vcombine.low %v1428_v43, %v1432_v45  ;;  %v3606_v10 = vcombine.low %v1436_v18, %v1440_v47  ;;  %v1132_v5 = vrot.slane %v6115_v2, %v5911_v34 }
 0x12e   : > { %v3112_v25 = vrot.slane %v3098_v48, %v5937_v37  ;;  %v3607_v33 = vcombine.low %v1444_v58, %v1448_v51  ;;  %v3614_v8 = vrot.slane %v3604_v52, %v5937_v37  ;;  %v1136_v59 = vrot.slane %v6115_v2, %v5914_v41 }
 0x12f   : > { %v3621_v60 = vrot.slane %v3605_v55, %v5937_v37  ;;  %v3628_v13 = vrot.slane %v3606_v10, %v5937_v37  ;;  %v1140_v35 = vrot.slane %v6115_v2, %v5917_v49  ;;  %v1144_v4 = vrot.slane %v6115_v2, %v5920_v50 }
 0x130   : > { %v3113_v7 = vcombine.low %v3105_v62, %v3112_v25  ;;  %v3635_v63 = vrot.slane %v3607_v33, %v5937_v37  ;;  %v1148_v12 = vrot.slane %v6115_v2, %v5925_v0  ;;  %v1152_v57 = vrot.slane %v6115_v2, %v5928_v9 }
 0x131   : > { %v3636_v23 = vcombine.low %v3614_v8, %v3621_v60  ;;  %v1156_v20 = vrot.slane %v6115_v2, %v5931_v21  ;;  %v1160_v54 = vrot.slane %v6115_v2, %v5934_v29  ;;  %v3163_v42 = vcombine.low %v1132_v5, %v1136_v59 }
 0x132   : > { %4976 = vperm.xlu1 %5547, %v3113_v7   ;;  %v3637_v56 = vcombine.low %v3628_v13, %v3635_v63  ;;  %v3164_v61 = vcombine.low %v1140_v35, %v1144_v4  ;;  %v3165_v28 = vcombine.low %v1148_v12, %v1152_v57  ;;  %v6495_v30 = vmul.f32 0.0051020407, %v372_v27  ;;  %v380_v63 = vpop.xlane.xlu1 %379 }
 0x133   : > { %v3644_v32 = vrot.slane %v3636_v23, %v5937_v37  ;;  %v3166_v36 = vcombine.low %v1156_v20, %v1160_v54  ;;  %v3173_v1 = vrot.slane %v3163_v42, %v5937_v37  ;;  %v6499_v39 = vmul.f32 0.0051020407, %v368_v16 }
 0x134   : > { %v3651_v22 = vrot.slane %v3637_v56, %v5937_v37  ;;  %v3180_v40 = vrot.slane %v3164_v61, %v5937_v37  ;;  %v3187_v2 = vrot.slane %v3165_v28, %v5937_v37  ;;  %v1484_v43 = vrot.slane %v6351_v38, %v5911_v34 }
 0x135   : > { %v3194_v45 = vrot.slane %v3166_v36, %v5937_v37  ;;  %v1488_v44 = vrot.slane %v6351_v38, %v5914_v41  ;;  %v1492_v46 = vrot.slane %v6351_v38, %v5917_v49  ;;  %v1496_v18 = vrot.slane %v6351_v38, %v5920_v50 }
 0x136   : > { %v3652_v47 = vcombine.low %v3644_v32, %v3651_v22  ;;  %v3195_v48 = vcombine.low %v3173_v1, %v3180_v40  ;;  %v1500_v58 = vrot.slane %v6351_v38, %v5925_v0  ;;  %v1504_v51 = vrot.slane %v6351_v38, %v5928_v9  ;;  %v376_v1 = vpop.xlane.xlu0 %375 }
 0x137   : > { %v3196_v52 = vcombine.low %v3187_v2, %v3194_v45  ;;  %v1508_v62 = vrot.slane %v6351_v38, %v5931_v21  ;;  %v1512_v55 = vrot.slane %v6351_v38, %v5934_v29  ;;  %v3702_v10 = vcombine.low %v1484_v43, %v1488_v44 }
 0x138   : > { %5009 = vperm.xlu0 %5546, %v3652_v47   ;;  %v3203_v5 = vrot.slane %v3195_v48, %v5937_v37  ;;  %v3703_v25 = vcombine.low %v1492_v46, %v1496_v18  ;;  %v3704_v33 = vcombine.low %v1500_v58, %v1504_v51  ;;  %v1196_v8 = vrot.slane %v6163_v6, %v5911_v34 }
 0x139   : > { %v3210_v59 = vrot.slane %v3196_v52, %v5937_v37  ;;  %v3705_v60 = vcombine.low %v1508_v62, %v1512_v55  ;;  %v3712_v13 = vrot.slane %v3702_v10, %v5937_v37  ;;  %v1200_v35 = vrot.slane %v6163_v6, %v5914_v41 }
 0x13a   : > { %v3719_v4 = vrot.slane %v3703_v25, %v5937_v37  ;;  %v3726_v38 = vrot.slane %v3704_v33, %v5937_v37  ;;  %v1204_v27 = vrot.slane %v6163_v6, %v5917_v49  ;;  %v1208_v7 = vrot.slane %v6163_v6, %v5920_v50 }
 0x13b   : > { %v3211_v12 = vcombine.low %v3203_v5, %v3210_v59  ;;  %v3733_v57 = vrot.slane %v3705_v60, %v5937_v37  ;;  %v1212_v23 = vrot.slane %v6163_v6, %v5925_v0  ;;  %v1216_v20 = vrot.slane %v6163_v6, %v5928_v9 }
 0x13c   : > { %v3734_v54 = vcombine.low %v3712_v13, %v3719_v4  ;;  %v1220_v42 = vrot.slane %v6163_v6, %v5931_v21  ;;  %v1224_v56 = vrot.slane %v6163_v6, %v5934_v29  ;;  %v3261_v61 = vcombine.low %v1196_v8, %v1200_v35 }
 0x13d   : > { %4982 = vperm.xlu1 %5547, %v3211_v12   ;;  %v3735_v28 = vcombine.low %v3726_v38, %v3733_v57  ;;  %v3262_v16 = vcombine.low %v1204_v27, %v1208_v7  ;;  %v3263_v32 = vcombine.low %v1212_v23, %v1216_v20  ;;  %v6543_v36 = vmul.f32 0.0051020407, %v380_v63  ;;  %v388_v57 = vpop.xlane.xlu1 %387 }
 0x13e   : > { %v3742_v22 = vrot.slane %v3734_v54, %v5937_v37  ;;  %v3264_v40 = vcombine.low %v1220_v42, %v1224_v56  ;;  %v3271_v2 = vrot.slane %v3261_v61, %v5937_v37  ;;  %v6547_v43 = vmul.f32 0.0051020407, %v376_v1 }
 0x13f   : > { %v3749_v45 = vrot.slane %v3735_v28, %v5937_v37  ;;  %v3278_v44 = vrot.slane %v3262_v16, %v5937_v37  ;;  %v3285_v6 = vrot.slane %v3263_v32, %v5937_v37  ;;  %v1548_v46 = vrot.slane %v6399_v14, %v5911_v34 }
 0x140   : > { %v3292_v18 = vrot.slane %v3264_v40, %v5937_v37  ;;  %v1552_v47 = vrot.slane %v6399_v14, %v5914_v41  ;;  %v1556_v48 = vrot.slane %v6399_v14, %v5917_v49  ;;  %v1560_v58 = vrot.slane %v6399_v14, %v5920_v50 }
 0x141   : > { %v3750_v51 = vcombine.low %v3742_v22, %v3749_v45  ;;  %v3293_v52 = vcombine.low %v3271_v2, %v3278_v44  ;;  %v1564_v62 = vrot.slane %v6399_v14, %v5925_v0  ;;  %v1568_v55 = vrot.slane %v6399_v14, %v5928_v9  ;;  %v384_v2 = vpop.xlane.xlu0 %383 }
 0x142   : > { %v3294_v10 = vcombine.low %v3285_v6, %v3292_v18  ;;  %v1572_v5 = vrot.slane %v6399_v14, %v5931_v21  ;;  %v1576_v25 = vrot.slane %v6399_v14, %v5934_v29  ;;  %v3800_v33 = vcombine.low %v1548_v46, %v1552_v47 }
 0x143   : > { %5015 = vperm.xlu0 %5546, %v3750_v51   ;;  %v3301_v8 = vrot.slane %v3293_v52, %v5937_v37  ;;  %v3801_v59 = vcombine.low %v1556_v48, %v1560_v58  ;;  %v3802_v60 = vcombine.low %v1564_v62, %v1568_v55  ;;  %v1260_v13 = vrot.slane %v6211_v11, %v5911_v34 }
 0x144   : > { %v3308_v35 = vrot.slane %v3294_v10, %v5937_v37  ;;  %v3803_v4 = vcombine.low %v1572_v5, %v1576_v25  ;;  %v3810_v38 = vrot.slane %v3800_v33, %v5937_v37  ;;  %v1264_v27 = vrot.slane %v6211_v11, %v5914_v41 }
 0x145   : > { %v3817_v7 = vrot.slane %v3801_v59, %v5937_v37  ;;  %v3824_v14 = vrot.slane %v3802_v60, %v5937_v37  ;;  %v1268_v63 = vrot.slane %v6211_v11, %v5917_v49  ;;  %v1272_v12 = vrot.slane %v6211_v11, %v5920_v50 }
 0x146   : > { %v3309_v23 = vcombine.low %v3301_v8, %v3308_v35  ;;  %v3831_v20 = vrot.slane %v3803_v4, %v5937_v37  ;;  %v1276_v54 = vrot.slane %v6211_v11, %v5925_v0  ;;  %v1280_v42 = vrot.slane %v6211_v11, %v5928_v9 }
 0x147   : > { %v3832_v56 = vcombine.low %v3810_v38, %v3817_v7  ;;  %v1284_v61 = vrot.slane %v6211_v11, %v5931_v21  ;;  %v1288_v28 = vrot.slane %v6211_v11, %v5934_v29  ;;  %v3359_v16 = vcombine.low %v1260_v13, %v1264_v27 }
 0x148   : > { %4988 = vperm.xlu1 %5547, %v3309_v23   ;;  %v3833_v32 = vcombine.low %v3824_v14, %v3831_v20  ;;  %v3360_v1 = vcombine.low %v1268_v63, %v1272_v12  ;;  %v3361_v22 = vcombine.low %v1276_v54, %v1280_v42  ;;  %v6591_v40 = vmul.f32 0.0051020407, %v388_v57  ;;  %v396_v20 = vpop.xlane.xlu1 %395 }
 0x149   : > { %v3840_v45 = vrot.slane %v3832_v56, %v5937_v37  ;;  %v3362_v44 = vcombine.low %v1284_v61, %v1288_v28  ;;  %v3369_v6 = vrot.slane %v3359_v16, %v5937_v37  ;;  %v6595_v46 = vmul.f32 0.0051020407, %v384_v2 }
 0x14a   : > { %v3847_v18 = vrot.slane %v3833_v32, %v5937_v37  ;;  %v3376_v47 = vrot.slane %v3360_v1, %v5937_v37  ;;  %v3383_v11 = vrot.slane %v3361_v22, %v5937_v37  ;;  %v1612_v48 = vrot.slane %v6447_v24, %v5911_v34 }
 0x14b   : > { %v3390_v58 = vrot.slane %v3362_v44, %v5937_v37  ;;  %v1616_v51 = vrot.slane %v6447_v24, %v5914_v41  ;;  %v1620_v52 = vrot.slane %v6447_v24, %v5917_v49  ;;  %v1624_v62 = vrot.slane %v6447_v24, %v5920_v50 }
 0x14c   : > { %v3848_v55 = vcombine.low %v3840_v45, %v3847_v18  ;;  %v3391_v10 = vcombine.low %v3369_v6, %v3376_v47  ;;  %v1628_v5 = vrot.slane %v6447_v24, %v5925_v0  ;;  %v1632_v25 = vrot.slane %v6447_v24, %v5928_v9  ;;  %v392_v6 = vpop.xlane.xlu0 %391 }
 0x14d   : > { %v3392_v33 = vcombine.low %v3383_v11, %v3390_v58  ;;  %v1636_v8 = vrot.slane %v6447_v24, %v5931_v21  ;;  %v1640_v59 = vrot.slane %v6447_v24, %v5934_v29  ;;  %v3898_v60 = vcombine.low %v1612_v48, %v1616_v51 }
 0x14e   : > { %5021 = vperm.xlu0 %5546, %v3848_v55   ;;  %v3399_v13 = vrot.slane %v3391_v10, %v5937_v37  ;;  %v3899_v35 = vcombine.low %v1620_v52, %v1624_v62  ;;  %v3900_v4 = vcombine.low %v1628_v5, %v1632_v25  ;;  %v1324_v38 = vrot.slane %v6259_v17, %v5911_v34 }
 0x14f   : > { %v3406_v27 = vrot.slane %v3392_v33, %v5937_v37  ;;  %v3901_v7 = vcombine.low %v1636_v8, %v1640_v59  ;;  %v3908_v14 = vrot.slane %v3898_v60, %v5937_v37  ;;  %v1328_v63 = vrot.slane %v6259_v17, %v5914_v41 }
 0x150   : > { %v3915_v12 = vrot.slane %v3899_v35, %v5937_v37  ;;  %v3922_v24 = vrot.slane %v3900_v4, %v5937_v37  ;;  %v1332_v57 = vrot.slane %v6259_v17, %v5917_v49  ;;  %v1336_v23 = vrot.slane %v6259_v17, %v5920_v50 }
 0x151   : > { %v3407_v54 = vcombine.low %v3399_v13, %v3406_v27  ;;  %v3929_v42 = vrot.slane %v3901_v7, %v5937_v37  ;;  %v1340_v56 = vrot.slane %v6259_v17, %v5925_v0  ;;  %v1344_v61 = vrot.slane %v6259_v17, %v5928_v9 }
 0x152   : > { %v3930_v28 = vcombine.low %v3908_v14, %v3915_v12  ;;  %v1348_v16 = vrot.slane %v6259_v17, %v5931_v21  ;;  %v1352_v32 = vrot.slane %v6259_v17, %v5934_v29  ;;  %v3457_v1 = vcombine.low %v1324_v38, %v1328_v63 }
 0x153   : > { %4994 = vperm.xlu1 %5547, %v3407_v54   ;;  %v3931_v22 = vcombine.low %v3922_v24, %v3929_v42  ;;  %v3458_v2 = vcombine.low %v1332_v57, %v1336_v23  ;;  %v3459_v45 = vcombine.low %v1340_v56, %v1344_v61  ;;  %v6639_v44 = vmul.f32 0.0051020407, %v396_v20  ;;  %v404_v42 = vpop.xlane.xlu1 %403 }
 0x154   : > { %v3938_v18 = vrot.slane %v3930_v28, %v5937_v37  ;;  %v3460_v47 = vcombine.low %v1348_v16, %v1352_v32  ;;  %v3467_v11 = vrot.slane %v3457_v1, %v5937_v37  ;;  %v6643_v48 = vmul.f32 0.0051020407, %v392_v6 }
 0x155   : > { %v3945_v58 = vrot.slane %v3931_v22, %v5937_v37  ;;  %v3474_v51 = vrot.slane %v3458_v2, %v5937_v37  ;;  %v3481_v17 = vrot.slane %v3459_v45, %v5937_v37  ;;  %v1676_v52 = vrot.slane %v6495_v30, %v5911_v34 }
 0x156   : > { %v3488_v62 = vrot.slane %v3460_v47, %v5937_v37  ;;  %v1680_v55 = vrot.slane %v6495_v30, %v5914_v41  ;;  %v1684_v10 = vrot.slane %v6495_v30, %v5917_v49  ;;  %v1688_v5 = vrot.slane %v6495_v30, %v5920_v50 }
 0x157   : > { %v3946_v25 = vcombine.low %v3938_v18, %v3945_v58  ;;  %v3489_v33 = vcombine.low %v3467_v11, %v3474_v51  ;;  %v1692_v8 = vrot.slane %v6495_v30, %v5925_v0  ;;  %v1696_v59 = vrot.slane %v6495_v30, %v5928_v9  ;;  %v400_v11 = vpop.xlane.xlu0 %399 }
 0x158   : > { %v3490_v60 = vcombine.low %v3481_v17, %v3488_v62  ;;  %v1700_v13 = vrot.slane %v6495_v30, %v5931_v21  ;;  %v1704_v35 = vrot.slane %v6495_v30, %v5934_v29  ;;  %v3996_v4 = vcombine.low %v1676_v52, %v1680_v55 }
 0x159   : > { %5027 = vperm.xlu0 %5546, %v3946_v25   ;;  %v3497_v38 = vrot.slane %v3489_v33, %v5937_v37  ;;  %v3997_v27 = vcombine.low %v1684_v10, %v1688_v5  ;;  %v3998_v7 = vcombine.low %v1692_v8, %v1696_v59  ;;  %v1388_v14 = vrot.slane %v6307_v53, %v5911_v34 }
 0x15a   : > { %v3504_v63 = vrot.slane %v3490_v60, %v5937_v37  ;;  %v3999_v12 = vcombine.low %v1700_v13, %v1704_v35  ;;  %v4006_v24 = vrot.slane %v3996_v4, %v5937_v37  ;;  %v1392_v57 = vrot.slane %v6307_v53, %v5914_v41 }
 0x15b   : > { %v4013_v23 = vrot.slane %v3997_v27, %v5937_v37  ;;  %v4020_v30 = vrot.slane %v3998_v7, %v5937_v37  ;;  %v1396_v20 = vrot.slane %v6307_v53, %v5917_v49  ;;  %v1400_v54 = vrot.slane %v6307_v53, %v5920_v50 }
 0x15c   : > { %v3505_v56 = vcombine.low %v3497_v38, %v3504_v63  ;;  %v4027_v61 = vrot.slane %v3999_v12, %v5937_v37  ;;  %v1404_v28 = vrot.slane %v6307_v53, %v5925_v0  ;;  %v1408_v16 = vrot.slane %v6307_v53, %v5928_v9 }
 0x15d   : > { %v4028_v32 = vcombine.low %v4006_v24, %v4013_v23  ;;  %v1412_v1 = vrot.slane %v6307_v53, %v5931_v21  ;;  %v1416_v22 = vrot.slane %v6307_v53, %v5934_v29  ;;  %v3555_v2 = vcombine.low %v1388_v14, %v1392_v57 }
 0x15e   : > { %5000 = vperm.xlu1 %5547, %v3505_v56   ;;  %v4029_v45 = vcombine.low %v4020_v30, %v4027_v61  ;;  %v3556_v6 = vcombine.low %v1396_v20, %v1400_v54  ;;  %v3557_v18 = vcombine.low %v1404_v28, %v1408_v16  ;;  %v6687_v47 = vmul.f32 0.0051020407, %v404_v42 }
 0x15f   : > { %v4036_v58 = vrot.slane %v4028_v32, %v5937_v37  ;;  %v3558_v51 = vcombine.low %v1412_v1, %v1416_v22  ;;  %v3565_v17 = vrot.slane %v3555_v2, %v5937_v37  ;;  %v6691_v52 = vmul.f32 0.0051020407, %v400_v11 }
 0x160   : > { %v4043_v62 = vrot.slane %v4029_v45, %v5937_v37  ;;  %v3572_v55 = vrot.slane %v3556_v6, %v5937_v37  ;;  %v3579_v53 = vrot.slane %v3557_v18, %v5937_v37  ;;  %v1740_v10 = vrot.slane %v6543_v36, %v5911_v34  ;;  %v412_v6 = vpop.xlane.xlu1 %411 }
 0x161   : > { %v3586_v5 = vrot.slane %v3558_v51, %v5937_v37  ;;  %v1744_v25 = vrot.slane %v6543_v36, %v5914_v41  ;;  %v1748_v33 = vrot.slane %v6543_v36, %v5917_v49  ;;  %v1752_v8 = vrot.slane %v6543_v36, %v5920_v50 }
 0x162   : > { %v4044_v59 = vcombine.low %v4036_v58, %v4043_v62  ;;  %v3587_v60 = vcombine.low %v3565_v17, %v3572_v55  ;;  %v1756_v13 = vrot.slane %v6543_v36, %v5925_v0  ;;  %v1760_v35 = vrot.slane %v6543_v36, %v5928_v9  ;;  %v408_v17 = vpop.xlane.xlu0 %407 }
 0x163   : > { %v3588_v4 = vcombine.low %v3579_v53, %v3586_v5  ;;  %v1764_v38 = vrot.slane %v6543_v36, %v5931_v21  ;;  %v1768_v27 = vrot.slane %v6543_v36, %v5934_v29  ;;  %v4094_v7 = vcombine.low %v1740_v10, %v1744_v25 }
 0x164   : > { %5033 = vperm.xlu0 %5546, %v4044_v59   ;;  %v3595_v14 = vrot.slane %v3587_v60, %v5937_v37  ;;  %v4095_v63 = vcombine.low %v1748_v33, %v1752_v8  ;;  %v4096_v12 = vcombine.low %v1756_v13, %v1760_v35  ;;  %v1452_v24 = vrot.slane %v6355_v15, %v5911_v34 }
 0x165   : > { %v3602_v57 = vrot.slane %v3588_v4, %v5937_v37  ;;  %v4097_v23 = vcombine.low %v1764_v38, %v1768_v27  ;;  %v4104_v30 = vrot.slane %v4094_v7, %v5937_v37  ;;  %v1456_v20 = vrot.slane %v6355_v15, %v5914_v41 }
 0x166   : > { %v4111_v54 = vrot.slane %v4095_v63, %v5937_v37  ;;  %v4118_v36 = vrot.slane %v4096_v12, %v5937_v37  ;;  %v1460_v42 = vrot.slane %v6355_v15, %v5917_v49  ;;  %v1464_v56 = vrot.slane %v6355_v15, %v5920_v50 }
 0x167   : > { %v3603_v61 = vcombine.low %v3595_v14, %v3602_v57  ;;  %v4125_v28 = vrot.slane %v4097_v23, %v5937_v37  ;;  %v1468_v16 = vrot.slane %v6355_v15, %v5925_v0  ;;  %v1472_v32 = vrot.slane %v6355_v15, %v5928_v9 }
 0x168   : > { %v4126_v1 = vcombine.low %v4104_v30, %v4111_v54  ;;  %v1476_v22 = vrot.slane %v6355_v15, %v5931_v21  ;;  %v1480_v2 = vrot.slane %v6355_v15, %v5934_v29  ;;  %v3653_v45 = vcombine.low %v1452_v24, %v1456_v20 }
 0x169   : > { %5006 = vperm.xlu1 %5547, %v3603_v61   ;;  %v4127_v18 = vcombine.low %v4118_v36, %v4125_v28  ;;  %v3654_v11 = vcombine.low %v1460_v42, %v1464_v56  ;;  %v3655_v58 = vcombine.low %v1468_v16, %v1472_v32  ;;  %v6735_v51 = vmul.f32 0.0051020407, %v412_v6 }
 0x16a   : > { %v4134_v62 = vrot.slane %v4126_v1, %v5937_v37  ;;  %v3656_v55 = vcombine.low %v1476_v22, %v1480_v2  ;;  %v3663_v53 = vrot.slane %v3653_v45, %v5937_v37  ;;  %v6739_v10 = vmul.f32 0.0051020407, %v408_v17 }
 0x16b   : > { %v4141_v5 = vrot.slane %v4127_v18, %v5937_v37  ;;  %v3670_v15 = vrot.slane %v3654_v11, %v5937_v37  ;;  %v3677_v25 = vrot.slane %v3655_v58, %v5937_v37  ;;  %v1804_v33 = vrot.slane %v6591_v40, %v5911_v34  ;;  %v420_v11 = vpop.xlane.xlu1 %419 }
 0x16c   : > { %v3684_v8 = vrot.slane %v3656_v55, %v5937_v37  ;;  %v1808_v59 = vrot.slane %v6591_v40, %v5914_v41  ;;  %v1812_v60 = vrot.slane %v6591_v40, %v5917_v49  ;;  %v1816_v13 = vrot.slane %v6591_v40, %v5920_v50 }
 0x16d   : > { %v4142_v35 = vcombine.low %v4134_v62, %v4141_v5  ;;  %v3685_v4 = vcombine.low %v3663_v53, %v3670_v15  ;;  %v1820_v38 = vrot.slane %v6591_v40, %v5925_v0  ;;  %v1824_v27 = vrot.slane %v6591_v40, %v5928_v9  ;;  %v416_v53 = vpop.xlane.xlu0 %415 }
 0x16e   : > { %v3686_v7 = vcombine.low %v3677_v25, %v3684_v8  ;;  %v1828_v14 = vrot.slane %v6591_v40, %v5931_v21  ;;  %v1832_v63 = vrot.slane %v6591_v40, %v5934_v29  ;;  %v4192_v12 = vcombine.low %v1804_v33, %v1808_v59 }
 0x16f   : > { %5039 = vperm.xlu0 %5546, %v4142_v35   ;;  %v3693_v24 = vrot.slane %v3685_v4, %v5937_v37  ;;  %v4193_v57 = vcombine.low %v1812_v60, %v1816_v13  ;;  %v4194_v23 = vcombine.low %v1820_v38, %v1824_v27  ;;  %v1516_v30 = vrot.slane %v6403_v26, %v5911_v34 }
 0x170   : > { %v3700_v20 = vrot.slane %v3686_v7, %v5937_v37  ;;  %v4195_v54 = vcombine.low %v1828_v14, %v1832_v63  ;;  %v4202_v36 = vrot.slane %v4192_v12, %v5937_v37  ;;  %v1520_v42 = vrot.slane %v6403_v26, %v5914_v41 }
 0x171   : > { %v4209_v56 = vrot.slane %v4193_v57, %v5937_v37  ;;  %v4216_v40 = vrot.slane %v4194_v23, %v5937_v37  ;;  %v1524_v61 = vrot.slane %v6403_v26, %v5917_v49  ;;  %v1528_v28 = vrot.slane %v6403_v26, %v5920_v50 }
 0x172   : > { %v3701_v16 = vcombine.low %v3693_v24, %v3700_v20  ;;  %v4223_v32 = vrot.slane %v4195_v54, %v5937_v37  ;;  %v1532_v1 = vrot.slane %v6403_v26, %v5925_v0  ;;  %v1536_v22 = vrot.slane %v6403_v26, %v5928_v9 }
 0x173   : > { %v4224_v2 = vcombine.low %v4202_v36, %v4209_v56  ;;  %v1540_v45 = vrot.slane %v6403_v26, %v5931_v21  ;;  %v1544_v6 = vrot.slane %v6403_v26, %v5934_v29  ;;  %v3751_v18 = vcombine.low %v1516_v30, %v1520_v42 }
 0x174   : > { %5012 = vperm.xlu1 %5547, %v3701_v16   ;;  %v4225_v58 = vcombine.low %v4216_v40, %v4223_v32  ;;  %v3752_v17 = vcombine.low %v1524_v61, %v1528_v28  ;;  %v3753_v62 = vcombine.low %v1532_v1, %v1536_v22  ;;  %v6783_v55 = vmul.f32 0.0051020407, %v420_v11  ;;  %v428_v1 = vpop.xlane.xlu1 %427 }
 0x175   : > { %v4232_v5 = vrot.slane %v4224_v2, %v5937_v37  ;;  %v3754_v15 = vcombine.low %v1540_v45, %v1544_v6  ;;  %v3761_v25 = vrot.slane %v3751_v18, %v5937_v37  ;;  %v6787_v33 = vmul.f32 0.0051020407, %v416_v53 }
 0x176   : > { %v4239_v8 = vrot.slane %v4225_v58, %v5937_v37  ;;  %v3768_v26 = vrot.slane %v3752_v17, %v5937_v37  ;;  %v3775_v59 = vrot.slane %v3753_v62, %v5937_v37  ;;  %v1868_v60 = vrot.slane %v6639_v44, %v5911_v34 }
 0x177   : > { %v3782_v13 = vrot.slane %v3754_v15, %v5937_v37  ;;  %v1872_v35 = vrot.slane %v6639_v44, %v5914_v41  ;;  %v1876_v4 = vrot.slane %v6639_v44, %v5917_v49  ;;  %v1880_v38 = vrot.slane %v6639_v44, %v5920_v50 }
 0x178   : > { %v4240_v27 = vcombine.low %v4232_v5, %v4239_v8  ;;  %v3783_v7 = vcombine.low %v3761_v25, %v3768_v26  ;;  %v1884_v14 = vrot.slane %v6639_v44, %v5925_v0  ;;  %v1888_v63 = vrot.slane %v6639_v44, %v5928_v9  ;;  %v424_v25 = vpop.xlane.xlu0 %423 }
 0x179   : > { %v3784_v12 = vcombine.low %v3775_v59, %v3782_v13  ;;  %v1892_v24 = vrot.slane %v6639_v44, %v5931_v21  ;;  %v1896_v57 = vrot.slane %v6639_v44, %v5934_v29  ;;  %v4290_v23 = vcombine.low %v1868_v60, %v1872_v35 }
 0x17a   : > { %5045 = vperm.xlu0 %5546, %v4240_v27   ;;  %v3791_v30 = vrot.slane %v3783_v7, %v5937_v37  ;;  %v4291_v20 = vcombine.low %v1876_v4, %v1880_v38  ;;  %v4292_v54 = vcombine.low %v1884_v14, %v1888_v63  ;;  %v1580_v36 = vrot.slane %v6451_v31, %v5911_v34 }
 0x17b   : > { %v3798_v42 = vrot.slane %v3784_v12, %v5937_v37  ;;  %v4293_v56 = vcombine.low %v1892_v24, %v1896_v57  ;;  %v4300_v40 = vrot.slane %v4290_v23, %v5937_v37  ;;  %v1584_v61 = vrot.slane %v6451_v31, %v5914_v41 }
 0x17c   : > { %v4307_v28 = vrot.slane %v4291_v20, %v5937_v37  ;;  %v4314_v44 = vrot.slane %v4292_v54, %v5937_v37  ;;  %v1588_v16 = vrot.slane %v6451_v31, %v5917_v49  ;;  %v1592_v32 = vrot.slane %v6451_v31, %v5920_v50 }
 0x17d   : > { %v3799_v22 = vcombine.low %v3791_v30, %v3798_v42  ;;  %v4321_v2 = vrot.slane %v4293_v56, %v5937_v37  ;;  %v1596_v45 = vrot.slane %v6451_v31, %v5925_v0  ;;  %v1600_v6 = vrot.slane %v6451_v31, %v5928_v9 }
 0x17e   : > { %v4322_v18 = vcombine.low %v4300_v40, %v4307_v28  ;;  %v1604_v11 = vrot.slane %v6451_v31, %v5931_v21  ;;  %v1608_v58 = vrot.slane %v6451_v31, %v5934_v29  ;;  %v3849_v17 = vcombine.low %v1580_v36, %v1584_v61 }
 0x17f   : > { %5018 = vperm.xlu1 %5547, %v3799_v22   ;;  %v4323_v62 = vcombine.low %v4314_v44, %v4321_v2  ;;  %v3850_v53 = vcombine.low %v1588_v16, %v1592_v32  ;;  %v3851_v5 = vcombine.low %v1596_v45, %v1600_v6  ;;  %v6831_v15 = vmul.f32 0.0051020407, %v428_v1  ;;  %v432_v2 = vpop.xlane.xlu0 %431 }
 0x180   : > { %v4330_v8 = vrot.slane %v4322_v18, %v5937_v37  ;;  %v3852_v26 = vcombine.low %v1604_v11, %v1608_v58  ;;  %v3859_v59 = vrot.slane %v3849_v17, %v5937_v37  ;;  %v6835_v60 = vmul.f32 0.0051020407, %v424_v25 }
 0x181   : > { %v4337_v13 = vrot.slane %v4323_v62, %v5937_v37  ;;  %v3866_v35 = vrot.slane %v3850_v53, %v5937_v37  ;;  %v3873_v31 = vrot.slane %v3851_v5, %v5937_v37  ;;  %v1932_v4 = vrot.slane %v6687_v47, %v5911_v34 }
 0x182   : > { %v3880_v38 = vrot.slane %v3852_v26, %v5937_v37  ;;  %v1936_v27 = vrot.slane %v6687_v47, %v5914_v41  ;;  %v1940_v7 = vrot.slane %v6687_v47, %v5917_v49  ;;  %v1944_v14 = vrot.slane %v6687_v47, %v5920_v50 }
 0x183   : > { %v4338_v63 = vcombine.low %v4330_v8, %v4337_v13  ;;  %v3881_v12 = vcombine.low %v3859_v59, %v3866_v35  ;;  %v1948_v24 = vrot.slane %v6687_v47, %v5925_v0  ;;  %v1952_v57 = vrot.slane %v6687_v47, %v5928_v9 }
 0x184   : > { %v3882_v23 = vcombine.low %v3873_v31, %v3880_v38  ;;  %v1956_v30 = vrot.slane %v6687_v47, %v5931_v21  ;;  %v1960_v20 = vrot.slane %v6687_v47, %v5934_v29  ;;  %v4388_v54 = vcombine.low %v1932_v4, %v1936_v27 }
 0x185   : > { %5051 = vperm.xlu0 %5546, %v4338_v63   ;;  %v3889_v36 = vrot.slane %v3881_v12, %v5937_v37  ;;  %v4389_v42 = vcombine.low %v1940_v7, %v1944_v14  ;;  %v4390_v56 = vcombine.low %v1948_v24, %v1952_v57  ;;  %v1644_v40 = vrot.slane %v6499_v39, %v5911_v34  ;;  %v436_v24 = vpop.xlane.xlu1 %435 }
 0x186   : > { %v3896_v61 = vrot.slane %v3882_v23, %v5937_v37  ;;  %v4391_v28 = vcombine.low %v1956_v30, %v1960_v20  ;;  %v4398_v44 = vrot.slane %v4388_v54, %v5937_v37  ;;  %v1648_v16 = vrot.slane %v6499_v39, %v5914_v41 }
 0x187   : > { %v4405_v32 = vrot.slane %v4389_v42, %v5937_v37  ;;  %v4412_v47 = vrot.slane %v4390_v56, %v5937_v37  ;;  %v1652_v1 = vrot.slane %v6499_v39, %v5917_v49  ;;  %v1656_v22 = vrot.slane %v6499_v39, %v5920_v50 }
 0x188   : > { %v3897_v45 = vcombine.low %v3889_v36, %v3896_v61  ;;  %v4419_v6 = vrot.slane %v4391_v28, %v5937_v37  ;;  %v1660_v18 = vrot.slane %v6499_v39, %v5925_v0  ;;  %v1664_v11 = vrot.slane %v6499_v39, %v5928_v9 }
 0x189   : > { %v4420_v58 = vcombine.low %v4398_v44, %v4405_v32  ;;  %v1668_v17 = vrot.slane %v6499_v39, %v5931_v21  ;;  %v1672_v62 = vrot.slane %v6499_v39, %v5934_v29  ;;  %v3947_v53 = vcombine.low %v1644_v40, %v1648_v16 }
 0x18a   : > { %5024 = vperm.xlu1 %5547, %v3897_v45   ;;  %v4421_v5 = vcombine.low %v4412_v47, %v4419_v6  ;;  %v3948_v25 = vcombine.low %v1652_v1, %v1656_v22  ;;  %v3949_v8 = vcombine.low %v1660_v18, %v1664_v11  ;;  %v6879_v26 = vmul.f32 0.0051020407, %v432_v2  ;;  %v440_v6 = vpop.xlane.xlu0 %439 }
 0x18b   : > { %v4428_v59 = vrot.slane %v4420_v58, %v5937_v37  ;;  %v3950_v13 = vcombine.low %v1668_v17, %v1672_v62  ;;  %v3957_v35 = vrot.slane %v3947_v53, %v5937_v37  ;;  %v1708_v31 = vrot.slane %v6547_v43, %v5911_v34 }
 0x18c   : > { %v4435_v4 = vrot.slane %v4421_v5, %v5937_v37  ;;  %v3964_v38 = vrot.slane %v3948_v25, %v5937_v37  ;;  %v3971_v39 = vrot.slane %v3949_v8, %v5937_v37  ;;  %v1712_v27 = vrot.slane %v6547_v43, %v5914_v41 }
 0x18d   : > { %v3978_v7 = vrot.slane %v3950_v13, %v5937_v37  ;;  %v1716_v14 = vrot.slane %v6547_v43, %v5917_v49  ;;  %v1720_v63 = vrot.slane %v6547_v43, %v5920_v50  ;;  %v1724_v12 = vrot.slane %v6547_v43, %v5925_v0 }
 0x18e   : > { %v4436_v57 = vcombine.low %v4428_v59, %v4435_v4  ;;  %v3979_v23 = vcombine.low %v3957_v35, %v3964_v38  ;;  %v1728_v30 = vrot.slane %v6547_v43, %v5928_v9  ;;  %v1732_v20 = vrot.slane %v6547_v43, %v5931_v21 }
 0x18f   : > { %v3980_v54 = vcombine.low %v3971_v39, %v3978_v7  ;;  %v1736_v36 = vrot.slane %v6547_v43, %v5934_v29  ;;  %v4045_v42 = vcombine.low %v1708_v31, %v1712_v27  ;;  %v4046_v56 = vcombine.low %v1716_v14, %v1720_v63 }
 0x190   : > { %5057 = vperm.xlu0 %5546, %v4436_v57   ;;  %v3987_v40 = vrot.slane %v3979_v23, %v5937_v37  ;;  %v4047_v61 = vcombine.low %v1724_v12, %v1728_v30  ;;  %v6904_v28 = vmul.f32 0.0051020407, %v436_v24  ;;  %v1772_v44 = vrot.slane %v6595_v46, %v5911_v34 }
 0x191   : > { %v3994_v16 = vrot.slane %v3980_v54, %v5937_v37  ;;  %v4048_v32 = vcombine.low %v1732_v20, %v1736_v36  ;;  %v4055_v47 = vrot.slane %v4045_v42, %v5937_v37  ;;  %v4062_v1 = vrot.slane %v4046_v56, %v5937_v37 }
 0x192   : > { %v4069_v43 = vrot.slane %v4047_v61, %v5937_v37  ;;  %v1776_v22 = vrot.slane %v6595_v46, %v5914_v41  ;;  %v1780_v2 = vrot.slane %v6595_v46, %v5917_v49  ;;  %v1784_v45 = vrot.slane %v6595_v46, %v5920_v50 }
 0x193   : > { %v3995_v18 = vcombine.low %v3987_v40, %v3994_v16  ;;  %v4076_v11 = vrot.slane %v4048_v32, %v5937_v37  ;;  %v4077_v58 = vcombine.low %v4055_v47, %v4062_v1  ;;  %v1788_v17 = vrot.slane %v6595_v46, %v5925_v0 }
 0x194   : > { %v1792_v62 = vrot.slane %v6595_v46, %v5928_v9  ;;  %v1796_v53 = vrot.slane %v6595_v46, %v5931_v21  ;;  %v1800_v5 = vrot.slane %v6595_v46, %v5934_v29  ;;  %v4143_v25 = vcombine.low %v1772_v44, %v1776_v22 }
 0x195   : > { %5030 = vperm.xlu1 %5547, %v3995_v18   ;;  %v4078_v8 = vcombine.low %v4069_v43, %v4076_v11  ;;  %v4085_v59 = vrot.slane %v4077_v58, %v5937_v37  ;;  %v4144_v13 = vcombine.low %v1780_v2, %v1784_v45  ;;  %v6928_v35 = vmul.f32 0.0051020407, %v440_v6  ;;  %v444_v18 = vpop.xlane.xlu1 %443 }
 0x196   : > { %v4145_v31 = vcombine.low %v1788_v17, %v1792_v62  ;;  %v4146_v4 = vcombine.low %v1796_v53, %v1800_v5  ;;  %v4153_v38 = vrot.slane %v4143_v25, %v5937_v37  ;;  %v2124_v39 = vrot.slane %v6831_v15, %v5911_v34 }
 0x197   : > { %v4092_v27 = vrot.slane %v4078_v8, %v5937_v37  ;;  %v4160_v7 = vrot.slane %v4144_v13, %v5937_v37  ;;  %v2128_v46 = vrot.slane %v6831_v15, %v5914_v41  ;;  %v2132_v14 = vrot.slane %v6831_v15, %v5917_v49 }
 0x198   : > { %v4167_v63 = vrot.slane %v4145_v31, %v5937_v37  ;;  %v4174_v12 = vrot.slane %v4146_v4, %v5937_v37  ;;  %v2136_v24 = vrot.slane %v6831_v15, %v5920_v50  ;;  %v2140_v57 = vrot.slane %v6831_v15, %v5925_v0 }
 0x199   : > { %v4093_v23 = vcombine.low %v4085_v59, %v4092_v27  ;;  %v4175_v30 = vcombine.low %v4153_v38, %v4160_v7  ;;  %v2144_v20 = vrot.slane %v6831_v15, %v5928_v9  ;;  %v2148_v54 = vrot.slane %v6831_v15, %v5931_v21 }
 0x19a   : > { %v4176_v36 = vcombine.low %v4167_v63, %v4174_v12  ;;  %v2152_v42 = vrot.slane %v6831_v15, %v5934_v29  ;;  %v4682_v56 = vcombine.low %v2124_v39, %v2128_v46  ;;  %v4683_v40 = vcombine.low %v2132_v14, %v2136_v24 }
 0x19b   : > { %5036 = vperm.xlu1 %5547, %v4093_v23   ;;  %v4183_v61 = vrot.slane %v4175_v30, %v5937_v37  ;;  %v4684_v44 = vcombine.low %v2140_v57, %v2144_v20  ;;  %v1836_v16 = vrot.slane %v6643_v48, %v5911_v34  ;;  %v1840_v32 = vrot.slane %v6643_v48, %v5914_v41 }
 0x19c   : > { %v4190_v47 = vrot.slane %v4176_v36, %v5937_v37  ;;  %v4685_v1 = vcombine.low %v2148_v54, %v2152_v42  ;;  %v4692_v43 = vrot.slane %v4682_v56, %v5937_v37  ;;  %v4699_v22 = vrot.slane %v4683_v40, %v5937_v37 }
 0x19d   : > { %v4706_v15 = vrot.slane %v4684_v44, %v5937_v37  ;;  %v1844_v2 = vrot.slane %v6643_v48, %v5917_v49  ;;  %v1848_v45 = vrot.slane %v6643_v48, %v5920_v50  ;;  %v1852_v6 = vrot.slane %v6643_v48, %v5925_v0 }
 0x19e   : > { %v4191_v11 = vcombine.low %v4183_v61, %v4190_v47  ;;  %v4713_v58 = vrot.slane %v4685_v1, %v5937_v37  ;;  %v4714_v17 = vcombine.low %v4692_v43, %v4699_v22  ;;  %v1856_v62 = vrot.slane %v6643_v48, %v5928_v9 }
 0x19f   : > { %v1860_v53 = vrot.slane %v6643_v48, %v5931_v21  ;;  %v1864_v5 = vrot.slane %v6643_v48, %v5934_v29  ;;  %v4241_v25 = vcombine.low %v1836_v16, %v1840_v32  ;;  %v4242_v8 = vcombine.low %v1844_v2, %v1848_v45 }
 0x1a0   : > { %5042 = vperm.xlu1 %5547, %v4191_v11   ;;  %v4715_v59 = vcombine.low %v4706_v15, %v4713_v58  ;;  %v4722_v13 = vrot.slane %v4714_v17, %v5937_v37  ;;  %v4243_v31 = vcombine.low %v1852_v6, %v1856_v62  ;;  %v6974_v4 = vmul.f32 0.0051020407, %v444_v18 }
 0x1a1   : > { %v4244_v38 = vcombine.low %v1860_v53, %v1864_v5  ;;  %v4251_v39 = vrot.slane %v4241_v25, %v5937_v37  ;;  %v4258_v27 = vrot.slane %v4242_v8, %v5937_v37  ;;  %v1900_v7 = vrot.slane %v6691_v52, %v5911_v34 }
 0x1a2   : > { %v4729_v46 = vrot.slane %v4715_v59, %v5937_v37  ;;  %v4265_v48 = vrot.slane %v4243_v31, %v5937_v37  ;;  %v1904_v14 = vrot.slane %v6691_v52, %v5914_v41  ;;  %v1908_v63 = vrot.slane %v6691_v52, %v5917_v49 }
 0x1a3   : > { %v4272_v12 = vrot.slane %v4244_v38, %v5937_v37  ;;  %v4273_v24 = vcombine.low %v4251_v39, %v4258_v27  ;;  %v1912_v57 = vrot.slane %v6691_v52, %v5920_v50  ;;  %v1916_v23 = vrot.slane %v6691_v52, %v5925_v0 }
 0x1a4   : > { %v4730_v30 = vcombine.low %v4722_v13, %v4729_v46  ;;  %v1920_v20 = vrot.slane %v6691_v52, %v5928_v9  ;;  %v1924_v54 = vrot.slane %v6691_v52, %v5931_v21  ;;  %v1928_v36 = vrot.slane %v6691_v52, %v5934_v29 }
 0x1a5   : > { %v4274_v42 = vcombine.low %v4265_v48, %v4272_v12  ;;  %v4281_v56 = vrot.slane %v4273_v24, %v5937_v37  ;;  %v4339_v40 = vcombine.low %v1900_v7, %v1904_v14  ;;  %v4340_v61 = vcombine.low %v1908_v63, %v1912_v57 }
 0x1a6   : > { %5075 = vperm.xlu0 %5546, %v4730_v30   ;;  %v4341_v44 = vcombine.low %v1916_v23, %v1920_v20  ;;  %v4342_v16 = vcombine.low %v1924_v54, %v1928_v36  ;;  %v2156_v32 = vrot.slane %v6879_v26, %v5911_v34  ;;  %v2160_v47 = vrot.slane %v6879_v26, %v5914_v41 }
 0x1a7   : > { %v4288_v1 = vrot.slane %v4274_v42, %v5937_v37  ;;  %v4349_v43 = vrot.slane %v4339_v40, %v5937_v37  ;;  %v4356_v52 = vrot.slane %v4340_v61, %v5937_v37  ;;  %v2164_v22 = vrot.slane %v6879_v26, %v5917_v49 }
 0x1a8   : > { %v4363_v15 = vrot.slane %v4341_v44, %v5937_v37  ;;  %v4370_v2 = vrot.slane %v4342_v16, %v5937_v37  ;;  %v2168_v45 = vrot.slane %v6879_v26, %v5920_v50  ;;  %v2172_v6 = vrot.slane %v6879_v26, %v5925_v0 }
 0x1a9   : > { %v4289_v18 = vcombine.low %v4281_v56, %v4288_v1  ;;  %v4371_v11 = vcombine.low %v4349_v43, %v4356_v52  ;;  %v2176_v58 = vrot.slane %v6879_v26, %v5928_v9  ;;  %v2180_v17 = vrot.slane %v6879_v26, %v5931_v21 }
 0x1aa   : > { %v4372_v62 = vcombine.low %v4363_v15, %v4370_v2  ;;  %v2184_v53 = vrot.slane %v6879_v26, %v5934_v29  ;;  %v4731_v5 = vcombine.low %v2156_v32, %v2160_v47  ;;  %v4732_v25 = vcombine.low %v2164_v22, %v2168_v45  ;;  %v7048_v47 = vpop.permute.xlu1 %4931 }
 0x1ab   : > { %5048 = vperm.xlu1 %5547, %v4289_v18   ;;  %v4379_v8 = vrot.slane %v4371_v11, %v5937_v37  ;;  %v4733_v59 = vcombine.low %v2172_v6, %v2176_v58  ;;  %v2092_v13 = vrot.slane %v6835_v60, %v5911_v34  ;;  %v2096_v31 = vrot.slane %v6835_v60, %v5914_v41 }
 0x1ac   : > { %v4386_v38 = vrot.slane %v4372_v62, %v5937_v37  ;;  %v4734_v39 = vcombine.low %v2180_v17, %v2184_v53  ;;  %v4741_v27 = vrot.slane %v4731_v5, %v5937_v37  ;;  %v4748_v7 = vrot.slane %v4732_v25, %v5937_v37 }
 0x1ad   : > { %v4755_v26 = vrot.slane %v4733_v59, %v5937_v37  ;;  %v2100_v46 = vrot.slane %v6835_v60, %v5917_v49  ;;  %v2104_v48 = vrot.slane %v6835_v60, %v5920_v50  ;;  %v2108_v14 = vrot.slane %v6835_v60, %v5925_v0 }
 0x1ae   : > { %v4387_v63 = vcombine.low %v4379_v8, %v4386_v38  ;;  %v4762_v12 = vrot.slane %v4734_v39, %v5937_v37  ;;  %v4763_v24 = vcombine.low %v4741_v27, %v4748_v7  ;;  %v2112_v57 = vrot.slane %v6835_v60, %v5928_v9  ;;  %v7076_v27 = vpop.permute.xlu1 %4934 }
 0x1af   : > { %v2116_v23 = vrot.slane %v6835_v60, %v5931_v21  ;;  %v2120_v30 = vrot.slane %v6835_v60, %v5934_v29  ;;  %v4633_v20 = vcombine.low %v2092_v13, %v2096_v31  ;;  %v4634_v54 = vcombine.low %v2100_v46, %v2104_v48 }
 0x1b0   : > { %5054 = vperm.xlu1 %5547, %v4387_v63   ;;  %v4764_v36 = vcombine.low %v4755_v26, %v4762_v12  ;;  %v4771_v42 = vrot.slane %v4763_v24, %v5937_v37  ;;  %v4635_v56 = vcombine.low %v2108_v14, %v2112_v57  ;;  %v2188_v40 = vrot.slane %v6904_v28, %v5911_v34 }
 0x1b1   : > { %v4636_v61 = vcombine.low %v2116_v23, %v2120_v30  ;;  %v4643_v44 = vrot.slane %v4633_v20, %v5937_v37  ;;  %v4650_v16 = vrot.slane %v4634_v54, %v5937_v37  ;;  %v2192_v32 = vrot.slane %v6904_v28, %v5914_v41 }
 0x1b2   : > { %v4778_v60 = vrot.slane %v4764_v36, %v5937_v37  ;;  %v4657_v1 = vrot.slane %v4635_v56, %v5937_v37  ;;  %v2196_v43 = vrot.slane %v6904_v28, %v5917_v49  ;;  %v2200_v52 = vrot.slane %v6904_v28, %v5920_v50 }
 0x1b3   : > { %v4664_v22 = vrot.slane %v4636_v61, %v5937_v37  ;;  %v4665_v15 = vcombine.low %v4643_v44, %v4650_v16  ;;  %v2204_v2 = vrot.slane %v6904_v28, %v5925_v0  ;;  %v2208_v45 = vrot.slane %v6904_v28, %v5928_v9 }
 0x1b4   : > { %v4779_v6 = vcombine.low %v4771_v42, %v4778_v60  ;;  %v2212_v18 = vrot.slane %v6904_v28, %v5931_v21  ;;  %v2216_v11 = vrot.slane %v6904_v28, %v5934_v29  ;;  %v4780_v58 = vcombine.low %v2188_v40, %v2192_v32 }
 0x1b5   : > { %v4666_v17 = vcombine.low %v4657_v1, %v4664_v22  ;;  %v4673_v62 = vrot.slane %v4665_v15, %v5937_v37  ;;  %v4781_v53 = vcombine.low %v2196_v43, %v2200_v52  ;;  %v4782_v5 = vcombine.low %v2204_v2, %v2208_v45  ;;  %v7105_v43 = vpop.permute.xlu1 %4937 }
 0x1b6   : > { %5078 = vperm.xlu0 %5546, %v4779_v6   ;;  %v4783_v25 = vcombine.low %v2212_v18, %v2216_v11  ;;  %v4790_v8 = vrot.slane %v4780_v58, %v5937_v37  ;;  %v1964_v59 = vrot.slane %v6739_v10, %v5911_v34  ;;  %v1968_v13 = vrot.slane %v6739_v10, %v5914_v41 }
 0x1b7   : > { %v4680_v31 = vrot.slane %v4666_v17, %v5937_v37  ;;  %v4797_v28 = vrot.slane %v4781_v53, %v5937_v37  ;;  %v4804_v38 = vrot.slane %v4782_v5, %v5937_v37  ;;  %v1972_v39 = vrot.slane %v6739_v10, %v5917_v49 }
 0x1b8   : > { %v4811_v7 = vrot.slane %v4783_v25, %v5937_v37  ;;  %v1976_v26 = vrot.slane %v6739_v10, %v5920_v50  ;;  %v1980_v46 = vrot.slane %v6739_v10, %v5925_v0  ;;  %v1984_v48 = vrot.slane %v6739_v10, %v5928_v9 }
 0x1b9   : > { %v4681_v14 = vcombine.low %v4673_v62, %v4680_v31  ;;  %v4812_v63 = vcombine.low %v4790_v8, %v4797_v28  ;;  %v1988_v12 = vrot.slane %v6739_v10, %v5931_v21  ;;  %v1992_v24 = vrot.slane %v6739_v10, %v5934_v29 }
 0x1ba   : > { %v4813_v57 = vcombine.low %v4804_v38, %v4811_v7  ;;  %v4437_v23 = vcombine.low %v1964_v59, %v1968_v13  ;;  %v4438_v30 = vcombine.low %v1972_v39, %v1976_v26  ;;  %v4439_v20 = vcombine.low %v1980_v46, %v1984_v48  ;;  %v7131_v46 = vpop.permute.xlu1 %4940 }
 0x1bb   : > { %5072 = vperm.xlu1 %5547, %v4681_v14   ;;  %v4820_v54 = vrot.slane %v4812_v63, %v5937_v37  ;;  %v4440_v36 = vcombine.low %v1988_v12, %v1992_v24  ;;  %v2220_v42 = vrot.slane %v6928_v35, %v5911_v34  ;;  %v2224_v56 = vrot.slane %v6928_v35, %v5914_v41 }
 0x1bc   : > { %v4827_v40 = vrot.slane %v4813_v57, %v5937_v37  ;;  %v4447_v61 = vrot.slane %v4437_v23, %v5937_v37  ;;  %v4454_v10 = vrot.slane %v4438_v30, %v5937_v37  ;;  %v4461_v44 = vrot.slane %v4439_v20, %v5937_v37 }
 0x1bd   : > { %v4468_v16 = vrot.slane %v4440_v36, %v5937_v37  ;;  %v2228_v32 = vrot.slane %v6928_v35, %v5917_v49  ;;  %v2232_v60 = vrot.slane %v6928_v35, %v5920_v50  ;;  %v2236_v1 = vrot.slane %v6928_v35, %v5925_v0 }
 0x1be   : > { %v4828_v52 = vcombine.low %v4820_v54, %v4827_v40  ;;  %v4469_v22 = vcombine.low %v4447_v61, %v4454_v10  ;;  %v2240_v15 = vrot.slane %v6928_v35, %v5928_v9  ;;  %v2244_v2 = vrot.slane %v6928_v35, %v5931_v21 }
 0x1bf   : > { %v4470_v45 = vcombine.low %v4461_v44, %v4468_v16  ;;  %v2248_v6 = vrot.slane %v6928_v35, %v5934_v29  ;;  %v4829_v18 = vcombine.low %v2220_v42, %v2224_v56  ;;  %v4830_v11 = vcombine.low %v2228_v32, %v2232_v60 }
 0x1c0   : > { %5081 = vperm.xlu0 %5546, %v4828_v52   ;;  %v4477_v58 = vrot.slane %v4469_v22, %v5937_v37  ;;  %v4831_v17 = vcombine.low %v2236_v1, %v2240_v15  ;;  %v1996_v62 = vrot.slane %v6735_v51, %v5911_v34  ;;  %v2000_v53 = vrot.slane %v6735_v51, %v5914_v41  ;;  %v7159_v15 = vpop.permute.xlu1 %4943 }
 0x1c1   : > { %v4484_v5 = vrot.slane %v4470_v45, %v5937_v37  ;;  %v4832_v25 = vcombine.low %v2244_v2, %v2248_v6  ;;  %v4839_v8 = vrot.slane %v4829_v18, %v5937_v37  ;;  %v4846_v59 = vrot.slane %v4830_v11, %v5937_v37 }
 0x1c2   : > { %v4853_v35 = vrot.slane %v4831_v17, %v5937_v37  ;;  %v2004_v13 = vrot.slane %v6735_v51, %v5917_v49  ;;  %v2008_v31 = vrot.slane %v6735_v51, %v5920_v50  ;;  %v2012_v28 = vrot.slane %v6735_v51, %v5925_v0 }
 0x1c3   : > { %v4485_v38 = vcombine.low %v4477_v58, %v4484_v5  ;;  %v4860_v39 = vrot.slane %v4832_v25, %v5937_v37  ;;  %v4861_v7 = vcombine.low %v4839_v8, %v4846_v59  ;;  %v2016_v26 = vrot.slane %v6735_v51, %v5928_v9 }
 0x1c4   : > { %v2020_v48 = vrot.slane %v6735_v51, %v5931_v21  ;;  %v2024_v14 = vrot.slane %v6735_v51, %v5934_v29  ;;  %v4486_v63 = vcombine.low %v1996_v62, %v2000_v53  ;;  %v4487_v12 = vcombine.low %v2004_v13, %v2008_v31 }
 0x1c5   : > { %5060 = vperm.xlu1 %5547, %v4485_v38   ;;  %v4862_v24 = vcombine.low %v4853_v35, %v4860_v39  ;;  %v4869_v57 = vrot.slane %v4861_v7, %v5937_v37  ;;  %v4488_v23 = vcombine.low %v2012_v28, %v2016_v26  ;;  %v2252_v30 = vrot.slane %v6974_v4, %v5911_v34 }
 0x1c6   : > { %v4489_v20 = vcombine.low %v2020_v48, %v2024_v14  ;;  %v4496_v54 = vrot.slane %v4486_v63, %v5937_v37  ;;  %v4503_v36 = vrot.slane %v4487_v12, %v5937_v37  ;;  %v2256_v42 = vrot.slane %v6974_v4, %v5914_v41  ;;  %v7183_v63 = vpop.permute.xlu1 %4946 }
 0x1c7   : > { %v4876_v51 = vrot.slane %v4862_v24, %v5937_v37  ;;  %v4510_v56 = vrot.slane %v4488_v23, %v5937_v37  ;;  %v2260_v40 = vrot.slane %v6974_v4, %v5917_v49  ;;  %v2264_v61 = vrot.slane %v6974_v4, %v5920_v50 }
 0x1c8   : > { %v4517_v10 = vrot.slane %v4489_v20, %v5937_v37  ;;  %v4518_v44 = vcombine.low %v4496_v54, %v4503_v36  ;;  %v2268_v16 = vrot.slane %v6974_v4, %v5925_v0  ;;  %v2272_v32 = vrot.slane %v6974_v4, %v5928_v9 }
 0x1c9   : > { %v4877_v60 = vcombine.low %v4869_v57, %v4876_v51  ;;  %v2276_v1 = vrot.slane %v6974_v4, %v5931_v21  ;;  %v2280_v52 = vrot.slane %v6974_v4, %v5934_v29  ;;  %v4878_v22 = vcombine.low %v2252_v30, %v2256_v42 }
 0x1ca   : > { %v4519_v2 = vcombine.low %v4510_v56, %v4517_v10  ;;  %v4526_v45 = vrot.slane %v4518_v44, %v5937_v37  ;;  %v4879_v6 = vcombine.low %v2260_v40, %v2264_v61  ;;  %v4880_v18 = vcombine.low %v2268_v16, %v2272_v32 }
 0x1cb   : > { %5084 = vperm.xlu0 %5546, %v4877_v60   ;;  %v4881_v11 = vcombine.low %v2276_v1, %v2280_v52  ;;  %v4888_v58 = vrot.slane %v4878_v22, %v5937_v37  ;;  %v2028_v17 = vrot.slane %v6787_v33, %v5911_v34  ;;  %v2032_v62 = vrot.slane %v6787_v33, %v5914_v41  ;;  %v7208_v60 = vpop.permute.xlu0 %4928 }
 0x1cc   : > { %v4533_v4 = vrot.slane %v4519_v2, %v5937_v37  ;;  %v4895_v53 = vrot.slane %v4879_v6, %v5937_v37  ;;  %v4902_v5 = vrot.slane %v4880_v18, %v5937_v37  ;;  %v2036_v25 = vrot.slane %v6787_v33, %v5917_v49 }
 0x1cd   : > { %v4909_v8 = vrot.slane %v4881_v11, %v5937_v37  ;;  %v2040_v59 = vrot.slane %v6787_v33, %v5920_v50  ;;  %v2044_v35 = vrot.slane %v6787_v33, %v5925_v0  ;;  %v2048_v13 = vrot.slane %v6787_v33, %v5928_v9 }
 0x1ce   : > { %v4534_v31 = vcombine.low %v4526_v45, %v4533_v4  ;;  %v4910_v28 = vcombine.low %v4888_v58, %v4895_v53  ;;  %v2052_v38 = vrot.slane %v6787_v33, %v5931_v21  ;;  %v2056_v39 = vrot.slane %v6787_v33, %v5934_v29 }
 0x1cf   : > { %v4911_v7 = vcombine.low %v4902_v5, %v4909_v8  ;;  %v4535_v26 = vcombine.low %v2028_v17, %v2032_v62  ;;  %v4536_v48 = vcombine.low %v2036_v25, %v2040_v59  ;;  %v4537_v14 = vcombine.low %v2044_v35, %v2048_v13  ;;  %v7217_v45 = vpop.permute.xlu0 %4955 }
 0x1d0   : > { %5063 = vperm.xlu1 %5547, %v4534_v31   ;;  %v4918_v12 = vrot.slane %v4910_v28, %v5937_v37  ;;  %v4538_v24 = vcombine.low %v2052_v38, %v2056_v39  ;;  %v2060_v57 = vrot.slane %v6783_v55, %v5911_v34  ;;  %v2064_v23 = vrot.slane %v6783_v55, %v5914_v41 }
 0x1d1   : > { %v4925_v30 = vrot.slane %v4911_v7, %v5937_v37  ;;  %v4545_v33 = vrot.slane %v4535_v26, %v5937_v37  ;;  %v4552_v20 = vrot.slane %v4536_v48, %v5937_v37  ;;  %v4559_v54 = vrot.slane %v4537_v14, %v5937_v37 }
 0x1d2   : > { %v4566_v36 = vrot.slane %v4538_v24, %v5937_v37  ;;  %v2068_v42 = vrot.slane %v6783_v55, %v5917_v49  ;;  %v2072_v51 = vrot.slane %v6783_v55, %v5920_v50  ;;  %v2076_v34 = vrot.slane %v6783_v55, %v5925_v0  ;;  %v7210_v0 = vpop.permute.xlu1 %4949 }
 0x1d3   : > { %v4926_v41 = vcombine.low %v4918_v12, %v4925_v30  ;;  %v4567_v56 = vcombine.low %v4545_v33, %v4552_v20  ;;  %v2080_v40 = vrot.slane %v6783_v55, %v5928_v9  ;;  %v2084_v61 = vrot.slane %v6783_v55, %v5931_v21  ;;  %v7223_v62 = vpop.permute.xlu0 %4961 }
 0x1d4   : > { %v4568_v10 = vcombine.low %v4559_v54, %v4566_v36  ;;  %v2088_v44 = vrot.slane %v6783_v55, %v5934_v29  ;;  %v4584_v16 = vcombine.low %v2060_v57, %v2064_v23  ;;  %v4585_v49 = vcombine.low %v2068_v42, %v2072_v51 }
 0x1d5   : > { %5087 = vperm.xlu0 %5546, %v4926_v41   ;;  %v4575_v50 = vrot.slane %v4567_v56, %v5937_v37  ;;  %v4586_v32 = vcombine.low %v2076_v34, %v2080_v40  ;;  %v7276_v41 = vand.u32 127, %v7550_v3 }
 0x1d6   : > { %v4582_v1 = vrot.slane %v4568_v10, %v5937_v37  ;;  %v4587_v9 = vcombine.low %v2084_v61, %v2088_v44  ;;  %v4594_v52 = vrot.slane %v4584_v16, %v5937_v37  ;;  %v4601_v21 = vrot.slane %v4585_v49, %v5937_v37  ;;  %v7220_v11 = vpop.permute.xlu1 %4952 }
 0x1d7   : > { %v4608_v22 = vrot.slane %v4586_v32, %v5937_v37  ;;  %v7227_v53 = vpop.permute.xlu0 %4967  ;;  %v5095_v40 = vadd.s32 4294967288, %v7276_v41  ;;  %v5102_v61 = vadd.s32 4294967280, %v7276_v41  ;;  %v5109_v10 = vadd.s32 4294967272, %v7276_v41 }
 0x1d8   : > { %v4583_v29 = vcombine.low %v4575_v50, %v4582_v1  ;;  %v4615_v55 = vrot.slane %v4587_v9, %v5937_v37  ;;  %v4616_v2 = vcombine.low %v4594_v52, %v4601_v21  ;;  %v7287_v16 = vsub.s32 %v7276_v41, %v5908_v19 }
 0x1d9   : > { %v7290_v49 = vsub.s32 %v5095_v40, %v5908_v19  ;;  %v7293_v50 = vsub.s32 %v5102_v61, %v5908_v19  ;;  %v5116_v32 = vadd.s32 4294967264, %v7276_v41  ;;  %v5123_v9 = vadd.s32 4294967256, %v7276_v41 }
 0x1da   : > { %5066 = vperm.xlu1 %5547, %v4583_v29   ;;  %v4617_v6 = vcombine.low %v4608_v22, %v4615_v55  ;;  %v4624_v18 = vrot.slane %v4616_v2, %v5937_v37  ;;  %v7225_v4 = vpop.permute.xlu1 %4958  ;;  %v7300_v52 = vsub.s32 %v5109_v10, %v5908_v19  ;;  %v5130_v21 = vadd.s32 4294967248, %v7276_v41 }
 0x1db   : > { %v7231_v25 = vpop.permute.xlu0 %4973  ;;  %v5094_v22 = vrot.slane %v7208_v60, %v7287_v16  ;;  %v5099_v29 = vrot.slane %v7048_v47, %v7290_v49  ;;  %v5106_v2 = vrot.slane %v7076_v27, %v7293_v50  ;;  %v7318_v60 = vsub.s32 %v5123_v9, %v5908_v19 }
 0x1dc   : > { %v4631_v58 = vrot.slane %v4617_v6, %v5937_v37  ;;  %v7311_v6 = vsub.s32 %v5116_v32, %v5908_v19  ;;  %v5137_v47 = vadd.s32 4294967240, %v7276_v41  ;;  %v5113_v27 = vrot.slane %v7105_v43, %v7300_v52 }
 0x1dd   : > { %v5165_v40 = vadd.s32 4294967208, %v7276_v41  ;;  %v7326_v61 = vsub.s32 %v5130_v21, %v5908_v19  ;;  %v5101_v32 = vsel %vm5100_vm1, %v5099_v29, %v5094_v22  ;;  %v5127_v22 = vrot.slane %v7159_v15, %v7318_v60 }
 0x1de   : > { %v4632_v17 = vcombine.low %v4624_v18, %v4631_v58  ;;  %v7229_v5 = vpop.permute.xlu1 %4964  ;;  %v5120_v43 = vrot.slane %v7131_v46, %v7311_v6  ;;  %v7347_v29 = vsub.s32 %v5137_v47, %v5908_v19  ;;  %v5158_v15 = vadd.s32 4294967216, %v7276_v41 }
 0x1df   : > { %v4980_v59 = vpop.permute.xlu0 %4979 }
 0x1e0   : > { %5069 = vperm.xlu1 %5547, %v4632_v17   ;;  %v5151_v17 = vadd.s32 4294967224, %v7276_v41 }
 0x1e2   : > { %v7233_v8 = vpop.permute.xlu1 %4970 }
 0x1e3   : > { %v7235_v13 = vpop.permute.xlu0 %4985 }
 0x1e6   : > { %v4977_v35 = vpop.permute.xlu1 %4976 }
 0x1e7   : > { %v7237_v28 = vpop.permute.xlu0 %4991  ;;  %v5203_v55 = vrot.slane %v4977_v35, %v7287_v16  ;;  %v5207_v35 = vrot.slane %v4980_v59, %v7290_v49  ;;  %v5108_v59 = vsel %vm5107_vm2, %v5106_v2, %v5101_v32  ;;  %v7353_v2 = vsub.s32 %v5165_v40, %v5908_v19 }
 0x1e8   : > { %v5115_v46 = vsel %vm5114_vm3, %v5113_v27, %v5108_v59  ;;  %v7385_v59 = vsub.s32 %v5158_v15, %v5908_v19 }
 0x1e9   : > { %v5208_v9 = vsel %vm5100_vm1, %v5207_v35, %v5203_v55  ;;  %v5217_v55 = vrot.slane %v7235_v13, %v7300_v52  ;;  %v5122_v13 = vsel %vm5121_vm4, %v5120_v43, %v5115_v46 }
 0x1ea   : > { %v4983_v31 = vpop.permute.xlu1 %4982 }
 0x1eb   : > { %v7241_v39 = vpop.permute.xlu0 %4997  ;;  %v5212_v18 = vrot.slane %v4983_v31, %v7293_v50  ;;  %v5144_v31 = vadd.s32 4294967232, %v7276_v41 }
 0x1ed   : > { %v5213_v3 = vsel %vm5107_vm2, %v5212_v18, %v5208_v9  ;;  %v7358_v18 = vsub.s32 %v5144_v31, %v5908_v19  ;;  %v5129_v31 = vsel %vm5128_vm5, %v5127_v22, %v5122_v13 }
 0x1ee   : > { %v7239_v38 = vpop.permute.xlu1 %4988 }
 0x1ef   : > { %v7245_v26 = vpop.permute.xlu0 %5003  ;;  %v5222_v21 = vrot.slane %v7239_v38, %v7311_v6  ;;  %v5134_v38 = vrot.slane %v7183_v63, %v7326_v61 }
 0x1f1   : > { %v5136_v9 = vsel %vm5135_vm6, %v5134_v38, %v5129_v31  ;;  %v5237_v38 = vrot.slane %v7241_v39, %v7347_v29 }
 0x1f2   : > { %v7243_v7 = vpop.permute.xlu1 %4994 }
 0x1f3   : > { %v7249_v14 = vpop.permute.xlu0 %5009  ;;  %v5232_v27 = vrot.slane %v7243_v7, %v7326_v61  ;;  %v5148_v7 = vrot.slane %v7220_v11, %v7358_v18 }
 0x1f6   : > { %v7247_v48 = vpop.permute.xlu1 %5000 }
 0x1f7   : > { %v7253_v24 = vpop.permute.xlu0 %5015 }
 0x1fa   : > { %v7251_v12 = vpop.permute.xlu1 %5006 }
 0x1fb   : > { %v7257_v23 = vpop.permute.xlu0 %5021 }
 0x1fe   : > { %v7255_v57 = vpop.permute.xlu1 %5012 }
 0x1ff   : > { %v7261_v33 = vpop.permute.xlu0 %5027 }
 0x200   : > { %v5286_v32 = vrot.slane %v7261_v33, %v7290_v49 }
 0x202   : > { %v7259_v30 = vpop.permute.xlu1 %5018 }
 0x203   : > { %v7265_v54 = vpop.permute.xlu0 %5033 }
 0x204   : > { %v5296_v15 = vrot.slane %v7265_v54, %v7300_v52 }
 0x207   : > { %v7269_v42 = vpop.permute.xlu0 %5039 }
 0x209   : > { %v7263_v20 = vpop.permute.xlu1 %5024 }
 0x20a   : > { %v5282_v47 = vrot.slane %v7263_v20, %v7287_v16  ;;  %v5227_v20 = vrot.slane %v7237_v28, %v7318_v60 }
 0x20b   : > { %v7273_v34 = vpop.permute.xlu0 %5045 }
 0x20c   : > { %v5287_v28 = vsel %vm5100_vm1, %v5286_v32, %v5282_v47  ;;  %v5306_v32 = vrot.slane %v7269_v42, %v7318_v60 }
 0x20f   : > { %v7283_v44 = vpop.permute.xlu0 %5051 }
 0x213   : > { %v7314_v58 = vpop.permute.xlu0 %5057 }
 0x214   : > { %v7267_v36 = vpop.permute.xlu1 %5030  ;;  %7556 = vst [vmem:[#allocation6_spill] sm:$0xff] %v7314_v58  ;;  %v7342_v58 = vsub.s32 %v5151_v17, %v5908_v19  ;;  %v5218_v17 = vsel %vm5114_vm3, %v5217_v55, %v5213_v3  ;;  %v5141_v3 = vrot.slane %v7210_v0, %v7347_v29  ;;  %v5172_v0 = vadd.s32 4294967200, %v7276_v41 }
 0x215   : > { %v5223_v35 = vsel %vm5121_vm4, %v5222_v21, %v5218_v17  ;;  %v5291_v63 = vrot.slane %v7267_v36, %v7293_v50  ;;  %v5242_v21 = vrot.slane %v7247_v48, %v7358_v18  ;;  %v5179_v17 = vadd.s32 4294967192, %v7276_v41 }
 0x216   : > { %v5228_v43 = vsel %vm5128_vm5, %v5227_v20, %v5223_v35  ;;  %v5155_v55 = vrot.slane %v7217_v45, %v7342_v58  ;;  %v5143_v46 = vsel %vm5142_vm7, %v5141_v3, %v5136_v9  ;;  %v7410_v45 = vsub.s32 %v5172_v0, %v5908_v19 }
 0x217   : > { %v5233_v33 = vsel %vm5135_vm6, %v5232_v27, %v5228_v43  ;;  %v5292_v22 = vsel %vm5107_vm2, %v5291_v63, %v5287_v28  ;;  %v5150_v48 = vsel %vm5149_vm8, %v5148_v7, %v5143_v46  ;;  %v5252_v35 = vrot.slane %v7251_v12, %v7385_v59 }
 0x218   : > { %v5238_v13 = vsel %vm5142_vm7, %v5237_v38, %v5233_v33  ;;  %v5297_v39 = vsel %vm5114_vm3, %v5296_v15, %v5292_v22  ;;  %v5193_v3 = vadd.s32 4294967176, %v7276_v41  ;;  %v5247_v20 = vrot.slane %v7245_v26, %v7342_v58 }
 0x219   : > { %v5243_v54 = vsel %vm5149_vm8, %v5242_v21, %v5238_v13  ;;  %v5157_v12 = vsel %vm5156_vm9, %v5155_v55, %v5150_v48  ;;  %v5186_v9 = vadd.s32 4294967184, %v7276_v41  ;;  %v5262_v42 = vrot.slane %v7255_v57, %v7410_v45 }
 0x21a   : > { %v7271_v51 = vpop.permute.xlu1 %5036  ;;  %v5182_v28 = vsub.s32 %v5179_v17, %v5908_v19  ;;  %v5316_v33 = vrot.slane %v7273_v34, %v7347_v29  ;;  %v5196_v22 = vsub.s32 %v5193_v3, %v5908_v19  ;;  %v5326_v15 = vrot.slane %v7283_v44, %v7342_v58 }
 0x21b   : > { %v5301_v11 = vrot.slane %v7271_v51, %v7311_v6  ;;  %v5162_v51 = vrot.slane %v7225_v4, %v7385_v59  ;;  %v5169_v4 = vrot.slane %v7223_v62, %v7353_v2  ;;  %v5248_v62 = vsel %vm5156_vm9, %v5247_v20, %v5243_v54 }
 0x21c   : > { %v5253_v26 = vsel %vm5163_vm10, %v5252_v35, %v5248_v62  ;;  %v5267_v38 = vrot.slane %v7253_v24, %v5182_v28 }
 0x21d   : > { %v5302_v27 = vsel %vm5121_vm4, %v5301_v11, %v5297_v39  ;;  %v5189_v11 = vsub.s32 %v5186_v9, %v5908_v19  ;;  %v5183_v19 = vrot.slane %v7227_v53, %v5182_v28 }
 0x21e   : > { %v5307_v7 = vsel %vm5128_vm5, %v5306_v32, %v5302_v27 }
 0x21f   : > { %v7278_v56 = vpop.permute.xlu1 %5042 }
 0x220   : > { %v5311_v63 = vrot.slane %v7278_v56, %v7326_v61  ;;  %v5164_v56 = vsel %vm5163_vm10, %v5162_v51, %v5157_v12  ;;  %v5176_v61 = vrot.slane %v7229_v5, %v7410_v45  ;;  %v5257_v5 = vrot.slane %v7249_v14, %v7353_v2 }
 0x221   : > { %v5171_v57 = vsel %vm5170_vm11, %v5169_v4, %v5164_v56  ;;  %v7558_v56 = vld [vmem:[#allocation5_spill] sm:$0xff] }
 0x222   : > { %v5312_v0 = vsel %vm5135_vm6, %v5311_v63, %v5307_v7  ;;  %v5258_v55 = vsel %vm5170_vm11, %v5257_v5, %v5253_v26  ;;  %v7559_v26 = vlaneseq }
 0x223   : > { %v5317_v14 = vsel %vm5142_vm7, %v5316_v33, %v5312_v0  ;;  %v5263_v29 = vsel %vm5177_vm12, %v5262_v42, %v5258_v55 }
 0x224   : > { %v5268_v53 = vsel %vm5184_vm13, %v5267_v38, %v5263_v29  ;;  %vm5414_vm0 = vcmp.lt.s32.totalorder %v7559_v26, 432 }
 0x225   : > { %v7339_v37 = vpop.permute.xlu0 %5075 }
 0x226   : > { %v5365_v34 = vrot.slane %v7339_v37, %v7290_v49  ;;  %v5197_v37 = vrot.slane %v7231_v25, %v5196_v22  ;;  %v5190_v49 = vrot.slane %v7233_v8, %v5189_v11 }
 0x22a   : > { %v7296_v1 = vpop.permute.xlu1 %5048 }
 0x22b   : > { %v5321_v43 = vrot.slane %v7296_v1, %v7358_v18  ;;  %v5178_v18 = vsel %vm5177_vm12, %v5176_v61, %v5171_v57 }
 0x22f   : > { %v7329_v10 = vpop.permute.xlu1 %5054 }
 0x230   : > { %v5331_v46 = vrot.slane %v7329_v10, %v7385_v59  ;;  %v5185_v10 = vsel %vm5184_vm13, %v5183_v19, %v5178_v18 }
 0x231   : > { %v5192_v54 = vsel %vm5191_vm14, %v5190_v49, %v5185_v10 }
 0x235   : > { %v7382_v36 = vpop.permute.xlu0 %5078 }
 0x23a   : > { %v7370_v40 = vpop.permute.xlu1 %5072 }
 0x23b   : > { %v5361_v21 = vrot.slane %v7370_v40, %v7287_v16  ;;  %v5272_v16 = vrot.slane %v7259_v30, %v5189_v11  ;;  %v5322_v40 = vsel %vm5149_vm8, %v5321_v43, %v5317_v14  ;;  %v5370_v30 = vrot.slane %v7382_v36, %v7293_v50  ;;  %v7557_v36 = vld [vmem:[#allocation6_spill] sm:$0xff] }
 0x23c   : > { %v5327_v24 = vsel %vm5156_vm9, %v5326_v15, %v5322_v40  ;;  %v5277_v50 = vrot.slane %v7257_v23, %v5196_v22  ;;  %v5336_v51 = vrot.slane %v7557_v36, %v7353_v2 }
 0x23d   : > { %v5366_v17 = vsel %vm5100_vm1, %v5365_v34, %v5361_v21  ;;  %v5273_v44 = vsel %vm5191_vm14, %v5272_v16, %v5268_v53  ;;  %v5332_v58 = vsel %vm5163_vm10, %v5331_v46, %v5327_v24 }
 0x23e   : > { %v5371_v25 = vsel %vm5107_vm2, %v5370_v30, %v5366_v17  ;;  %v5278_v63 = vsel %vm5198_vm15, %v5277_v50, %v5273_v44  ;;  %v5337_v23 = vsel %vm5170_vm11, %v5336_v51, %v5332_v58 }
 0x23f   : > { %v7420_v31 = vpop.permute.xlu0 %5081 }
 0x240   : > { %v5375_v13 = vrot.slane %v7420_v31, %v7300_v52  ;;  %v5199_v31 = vsel %vm5198_vm15, %v5197_v37, %v5192_v54 }
 0x244   : > { %v7405_v47 = vpop.permute.xlu1 %5060 }
 0x245   : > { %v5341_v8 = vrot.slane %v7405_v47, %v7410_v45  ;;  %v5376_v47 = vsel %vm5114_vm3, %v5375_v13, %v5371_v25 }
 0x247   : > { %v5342_v45 = vsel %vm5177_vm12, %v5341_v8, %v5337_v23 }
 0x24a   : > { %v5085_v1 = vpop.permute.xlu0 %5084 }
 0x24b   : > { %v5380_v35 = vrot.slane %v5085_v1, %v7311_v6  ;;  %v5387_v6 = vcombine.low %v5199_v31, %v5278_v63 }
 0x24d   : > { %v5381_v20 = vsel %vm5121_vm4, %v5380_v35, %v5376_v47  ;;  %v5395_v61 = vrot.slane %v5387_v6, %v7558_v56 }
 0x24f   : > { %v5064_v41 = vpop.permute.xlu1 %5063 }
 0x250   : > { %v5346_v39 = vrot.slane %v5064_v41, %v5182_v28 }
 0x252   : > { %v5347_v4 = vsel %vm5184_vm13, %v5346_v39, %v5342_v45 }
 0x254   : > { %v5088_v59 = vpop.permute.xlu0 %5087 }
 0x255   : > { %v5385_v2 = vrot.slane %v5088_v59, %v7318_v60 }
 0x257   : > { %v5386_v12 = vsel %vm5128_vm5, %v5385_v2, %v5381_v20 }
 0x259   : > { %v5067_v48 = vpop.permute.xlu1 %5066 }
 0x25a   : > { %v5351_v27 = vrot.slane %v5067_v48, %v5189_v11 }
 0x25c   : > { %v5352_v32 = vsel %vm5191_vm14, %v5351_v27, %v5347_v4 }
 0x25f   : > { %v5070_v52 = vpop.permute.xlu1 %5069 }
 0x260   : > { %v5356_v3 = vrot.slane %v5070_v52, %v5196_v22 }
 0x262   : > { %v5357_v9 = vsel %vm5198_vm15, %v5356_v3, %v5352_v32 }
 0x263   : > { %v5388_v60 = vcombine.low %v5357_v9, %v5386_v12 }
 0x265   : > { %v5402_v62 = vrot.slane %v5388_v60, %v7558_v56 }
 0x267   : > { %v5403_v7 = vcombine.low %v5395_v61, %v5402_v62 }
 0x269   : > { %v5410_v42 = vrot.slane %v5403_v7, %v7558_v56 }
 0x26b   : > { %5416 = vst.msk [vmem:[%s112_s26] sm:$0xf] %vm5414_vm0, %v5410_v42 }
 0x26c   : > { %5561 = shalt.err (!%p5558_p3)
}
 0x26d   : > { %s5562_s11 = scalar_lea.hbm %s7506_s30, 64  ;;  %s5566_s18 = scalar_lea.hbm %s7549_s1, 128 }
 0x26e   : > { %p5563_p4 = scmp.ne.s32.totalorder %s7506_s30, %s5562_s11  ;;  %p5567_p9 = scmp.lt.u32.totalorder %s7506_s30, %s7549_s1 }
 0x26f   : > { %p5568_p10 = scmp.lt.u32.totalorder %s5566_s18, %s5562_s11  ;;  %p5570_p12 = scmp.lt.u32.totalorder %s5562_s11, %s7506_s30 }
 0x270   : > { %p5564_p7 = pnand %p5563_p4, %p5663_p5 }
 0x271   : > { %p5569_p11 = por %p5568_p10, %p5567_p9 }
 0x272   : > { %p5565_p8 = pneg %p5564_p7 }
 0x273   : > { %p5571_p13 = por %p5570_p12, %p5569_p11 }
 0x275   : > { %p5572_p0 = pnand %p5571_p13, %p5565_p8 }
 0x277   : > { %5575 = shalt.err (!%p5572_p0)
}
 0x278   : > { %5505 = dma.vmem_to_hbm [thread:$0]  (%p5663_p5), %s7508_s27, 64, %s7506_s30, %s5418_s2  }
 0x279 PF: > { %p5511_p1 = scmp.ge.s32.totalorder %s5610_s9, 2  ;;  %s5444_s21 = sand.u32 1, %s5598_s6  }
 0x27a   : > { %s5445_s22 = scalar_lea.sflag [#allocation3], %s5444_s21 }
 0x27b   : > { %p5508_p2 = pnand %p5511_p1, %p5667_p6 }
 0x27d   : > { %5593 = dma.done.wait (!%p5508_p2), %s5445_s22, 64  }
 0x27e   : > { %5595 = vsyncadd (!%p5508_p2), %s5445_s22, 4294967232  ;;  %p11_p3 = scmp.ge.s32.totalorder %s5650_s12, 4   ;;  %s7560_s6 = smov %s5602_s7 }
 0x27f   : > { %s7561_s7 = smov %s5606_s8  ;;  %s7562_s8 = smov %s5661_s15 }
 0x280   : > { %s7563_s9 = smov %s5650_s12  ;;  %13 = sbr.rel (!%p11_p3) target bundleno = 3 (0x3), region = 59 }
 0x287   :  { %5450 = vsyncpa [#allocation3], 1 }
 0x288   :  { %5452 = vsyncpa [#allocation3 + $0x1], 1 }

</bundles_post_ra>
